<compile_context>
chip_gen: v7x
topology: tpu7x:2x2x1
jax: 0.10.0
libtpu: 0.0.40
codegen_flags: <defaults>
</compile_context>

<pallas_src>
import functools
import math

import jax
import jax.numpy as jnp
import numpy as np
from jax.experimental import pallas as pl
from jax.experimental.pallas import tpu as pltpu


def _round_up(x, m):
    return ((x + m - 1) // m) * m


def _tpu_defaults(tm_request):
    """Per-generation (v5e/v6e vs v7x) tile size and scoped-VMEM limit."""
    vmem_cap = None
    try:
        info = pltpu.get_tpu_info()
        for name in ("vmem_capacity_bytes", "vmem_bytes", "vmem_size_bytes"):
            v = getattr(info, name, None)
            if isinstance(v, (int, np.integer)) and v > 0:
                vmem_cap = int(v)
                break
    except Exception:
        pass
    if vmem_cap is not None and vmem_cap >= 100 * (1 << 20):
        # v5e / v6e: 128 MiB physical VMEM -> big row tiles, generous limit.
        return (1024 if tm_request is None else tm_request, 64 * (1 << 20))
    # v7x (64 MiB per TensorCore) or unknown hardware: stay conservative.
    return (512 if tm_request is None else tm_request, 40 * (1 << 20))


# ----------------------------- Pallas kernel ------------------------------- #
def _tpa_kernel(bias_ref, z_ref, t_ref, wq2_ref, wkv_ref, wo2_ref, bo_ref,
                sel_ref, o_ref):
    """One tile of tm flattened residue-pair rows.

    bias_ref: (1, S)        SMEM, inf * (mask - 1), read as scalars
    z_ref   : (tm, C_z)
    t_ref   : (S, tm, C_t)
    wq2_ref : (C_z, 2*HC)   [Wq | Wq], pre-scaled by 1/sqrt(c_hidden)
    wkv_ref : (C_t, 2*HC)   [Wk | Wv] fused -> one 128-wide matmul per template
    wo2_ref : (2*HC, C_zp)  [0 ; Wo], gated by (sum(mask) > 0), lane-padded
    bo_ref  : (1, C_zp)     gated, lane-padded, f32
    sel_ref : (2*HC, 2*HC)  0/1 selector: broadcasts each head's q.k logit onto
                            that head's V-half lanes (keeps everything lane-dense)
    o_ref   : (tm, C_zp)
    """
    S = t_ref.shape[0]
    sel = sel_ref[...]
    cdt = sel.dtype

    # q (duplicated onto K and V halves so all elementwise ops stay 128-wide)
    q2 = jnp.dot(z_ref[...], wq2_ref[...],
                 preferred_element_type=jnp.float32)            # (tm, 2HC) f32

    # fused K|V projection, one matmul per template (S is small & static;
    # t_ref[s] is a clean leading-axis view, no in-kernel reshape needed)
    kv = [jnp.dot(t_ref[s], wkv_ref[...], preferred_element_type=jnp.float32)
          for s in range(S)]                                    # S x (tm, 2HC)

    # per-head logits, broadcast onto V-half lanes via the 0/1 selector matmul.
    # K-half lanes carry only the bias and are killed by the zero rows of Wo2.
    logits = []
    for s in range(S):
        qk = (q2 * kv[s]).astype(cdt)
        l = jnp.dot(qk, sel, preferred_element_type=jnp.float32)  # (tm, 2HC)
        logits.append(l + bias_ref[0, s])                         # scalar (SMEM)

    # numerically stable softmax over the (unrolled) template axis.
    # all-templates-masked: every logit ~ -inf + qk -> finite softmax, no NaN;
    # the output is zeroed by the gate folded into Wo2/bo on the host.
    m = logits[0]
    for s in range(1, S):
        m = jnp.maximum(m, logits[s])
    e = [jnp.exp(l - m) for l in logits]
    denom = e[0]
    for s in range(1, S):
        denom = denom + e[s]
    inv = pl.reciprocal(denom, approx=True)      # EUP slot; ~1e-3 rel error

    acc = jnp.zeros_like(q2)
    for s in range(S):
        acc = acc + (e[s] * inv) * kv[s]         # V-half lanes: sum_s p_s * v_s

    # output projection (acc downcast to weight dtype; acceptable for inference)
    out = jnp.dot(acc.astype(wo2_ref.dtype), wo2_ref[...],
                  preferred_element_type=jnp.float32)
    out = out + bo_ref[...]
    o_ref[...] = out.astype(o_ref.dtype)


# ------------------------------- wrapper ------------------------------------ #
def template_pointwise_attention(t, z, template_mask, params, *, inf=1e9,
                                 compute_dtype=jnp.bfloat16, tm=None):
    """t:[S,N,N,C_t]  z:[N,N,C_z]  template_mask:[S]  ->  [N,N,C_z]"""
    S, N, N2, C_t = t.shape
    assert N == N2
    C_z = z.shape[-1]
    H, C = params["no_heads"], params["c_hidden"]
    HC = H * C
    HC2 = 2 * HC
    M = N * N

    cdt = jnp.dtype(compute_dtype)
    tm_target, vmem_limit = _tpu_defaults(tm)

    # --- robust row tiling: pad M up to a multiple of the tile instead of
    # shrinking the tile (avoids the tiny-tile cliff for non-power-of-two N).
    sub = 16 if cdt.itemsize < 4 else 8          # sublane granularity
    tile = _round_up(min(tm_target, _round_up(M, sub)), sub)
    # give both TensorCores work (v7x megacore) whenever the problem allows it
    if M > sub and _round_up(M, tile) == tile:
        tile = max(sub, _round_up(pl.cdiv(M, 2), sub))
    M_pad = _round_up(M, tile)
    grid = (M_pad // tile,)

    # lane-pad output channels to a multiple of 128 for unmasked stores
    C_zp = _round_up(C_z, 128)

    # --- data prep (bf16 by default: this kernel is HBM-bound) ---
    z2 = jnp.pad(z.reshape(M, C_z).astype(cdt), ((0, M_pad - M), (0, 0)))
    t2 = jnp.pad(t.reshape(S, M, C_t).astype(cdt),
                 ((0, 0), (0, M_pad - M), (0, 0)))

    mask_f = template_mask.astype(jnp.float32)
    bias = (inf * (mask_f - 1.0)).reshape(1, S).astype(jnp.float32)
    # "any template present" gate; folded into Wo2/bo so all-masked -> exact 0
    gate = (jnp.sum(mask_f) > 0).astype(jnp.float32)

    # --- weight prep (all folding done once, on the host) ---
    scale = 1.0 / math.sqrt(C)
    wq2 = (jnp.concatenate([params["wq"], params["wq"]], axis=1) * scale).astype(cdt)
    wkv = jnp.concatenate([params["wk"], params["wv"]], axis=1).astype(cdt)
    wo_p = jnp.pad(params["wo"], ((0, 0), (0, C_zp - C_z)))
    wo2 = (jnp.concatenate([jnp.zeros((HC, C_zp), jnp.float32), wo_p], axis=0)
           * gate).astype(cdt)
    bo = (jnp.pad(params["bo"], (0, C_zp - C_z)) * gate).astype(jnp.float32)
    bo = bo.reshape(1, C_zp)

    # 0/1 selector (host constant): sel[i, j] = 1 iff row i is a K-half channel
    # of head h and column j is a V-half channel of the same head h.
    ii = np.arange(HC2)[:, None]
    jj = np.arange(HC2)[None, :]
    sel_np = ((ii < HC) & (jj >= HC) & ((ii // C) == ((jj - HC) // C)))
    sel = jnp.asarray(sel_np.astype(np.float32)).astype(cdt)

    itemsize = cdt.itemsize
    flops = int(M_pad * (2 * C_z * HC2 + S * 2 * C_t * HC2 + S * 2 * HC2 * HC2
                         + S * 8 * HC2 + 2 * HC2 * C_zp))
    transcendentals = int(M_pad * S * HC2)
    bytes_accessed = int(itemsize * (M_pad * C_z + S * M_pad * C_t + M_pad * C_zp)
                         + itemsize * HC2 * (C_z + C_t + C_zp + HC2)
                         + 4 * (C_zp + S))

    out = pl.pallas_call(
        _tpa_kernel,
        out_shape=jax.ShapeDtypeStruct((M_pad, C_zp), cdt),
        grid=grid,
        in_specs=[
            pl.BlockSpec(memory_space=pltpu.MemorySpace.SMEM),    # bias (1, S)
            pl.BlockSpec((tile, C_z), lambda i: (i, 0)),          # z tile
            pl.BlockSpec((S, tile, C_t), lambda i: (0, i, 0)),    # t tile
            pl.BlockSpec((C_z, HC2), lambda i: (0, 0)),           # [Wq|Wq] scaled
            pl.BlockSpec((C_t, HC2), lambda i: (0, 0)),           # [Wk|Wv]
            pl.BlockSpec((HC2, C_zp), lambda i: (0, 0)),          # [0;Wo] gated
            pl.BlockSpec((1, C_zp), lambda i: (0, 0)),            # bo gated
            pl.BlockSpec((HC2, HC2), lambda i: (0, 0)),           # head selector
        ],
        out_specs=pl.BlockSpec((tile, C_zp), lambda i: (i, 0)),
        compiler_params=pltpu.CompilerParams(
            dimension_semantics=("parallel",),
            vmem_limit_bytes=vmem_limit,
        ),
        cost_estimate=pl.CostEstimate(flops=flops,
                                      transcendentals=transcendentals,
                                      bytes_accessed=bytes_accessed),
    )(bias, z2, t2, wq2, wkv, wo2, bo, sel)

    return out[:M, :C_z].reshape(N, N, C_z)


# --------------------------- pure-JAX reference ----------------------------- #
def reference(t, z, template_mask, params, *, inf=1e9):
    S, N, _, C_t = t.shape
    C_z = z.shape[-1]
    H, C = params["no_heads"], params["c_hidden"]
    mask_f = template_mask.astype(jnp.float32)
    bias = inf * (mask_f - 1.0)                                     # (S,)
    q = (z @ params["wq"]).reshape(N, N, H, C) / math.sqrt(C)
    k = jnp.einsum("sijc,cd->sijd", t, params["wk"]).reshape(S, N, N, H, C)
    v = jnp.einsum("sijc,cd->sijd", t, params["wv"]).reshape(S, N, N, H, C)
    logits = jnp.einsum("ijhc,sijhc->ijhs", q, k) + bias[None, None, None, :]
    p = jax.nn.softmax(logits, axis=-1)
    o = jnp.einsum("ijhs,sijhc->ijhc", p, v).reshape(N, N, H * C)
    out = o @ params["wo"] + params["bo"]
    gate = (jnp.sum(mask_f) > 0).astype(jnp.float32)
    return out * gate


# ------------------------------- params ------------------------------------- #
def init_params(key, c_t, c_z, c_hidden, no_heads):
    k1, k2, k3, k4, k5 = jax.random.split(key, 5)
    hc = no_heads * c_hidden
    return {
        "wq": 0.1 * jax.random.normal(k1, (c_z, hc), jnp.float32),
        "wk": 0.1 * jax.random.normal(k2, (c_t, hc), jnp.float32),
        "wv": 0.1 * jax.random.normal(k3, (c_t, hc), jnp.float32),
        "wo": 0.1 * jax.random.normal(k4, (hc, c_z), jnp.float32),
        "bo": 0.1 * jax.random.normal(k5, (c_z,), jnp.float32),
        "no_heads": no_heads,
        "c_hidden": c_hidden,
    }


if __name__ == "__main__":
    # small, module-consistent shapes
    N_templ, N_res = 4, 16
    C_t, C_z, C_hidden, no_heads = 16, 32, 16, 4
    inf = 1e9

    key = jax.random.PRNGKey(0)
    kt, kz, kp = jax.random.split(key, 3)
    t = jax.random.normal(kt, (N_templ, N_res, N_res, C_t), jnp.float32)
    z = jax.random.normal(kz, (N_res, N_res, C_z), jnp.float32)
    template_mask = jnp.array([1.0, 1.0, 0.0, 1.0], jnp.float32)
    params = init_params(kp, C_t, C_z, C_hidden, no_heads)

    ref = reference(t, z, template_mask, params, inf=inf)

    # f32 path (tight tolerance; slack only for the EUP approx-reciprocal)
    out_f32 = template_pointwise_attention(t, z, template_mask, params, inf=inf,
                                           compute_dtype=jnp.float32)
    out_f32 = jax.block_until_ready(out_f32)
    np.testing.assert_allclose(np.asarray(out_f32, np.float32), np.asarray(ref),
                               rtol=2e-3, atol=2e-3)

    # bf16 path (the perf configuration; tolerance covers bf16 inputs/weights/out)
    out_bf16 = template_pointwise_attention(t, z, template_mask, params, inf=inf,
                                            compute_dtype=jnp.bfloat16)
    out_bf16 = jax.block_until_ready(out_bf16)
    np.testing.assert_allclose(np.asarray(out_bf16, np.float32), np.asarray(ref),
                               rtol=6e-2, atol=6e-2)

    # non-power-of-two rows (exercises row padding) + all-templates-masked gate
    N_small = 10                      # M = 100, not a multiple of the tile
    t_b = jax.random.normal(kt, (N_templ, N_small, N_small, C_t), jnp.float32)
    z_b = jax.random.normal(kz, (N_small, N_small, C_z), jnp.float32)
    mask0 = jnp.zeros((N_templ,), jnp.float32)
    out_b = template_pointwise_attention(t_b, z_b, mask0, params, inf=inf,
                                         compute_dtype=jnp.bfloat16)
    out_b = jax.block_until_ready(out_b)
    ref_b = reference(t_b, z_b, mask0, params, inf=inf)
    np.testing.assert_allclose(np.asarray(out_b, np.float32), np.asarray(ref_b),
                               rtol=6e-2, atol=6e-2)

    print("KERNEL_OK")
</pallas_src>

<mosaic_0001>
module attributes {stable_mosaic.version = 11 : i64} {
  func.func @_tpa_kernel(%arg0: i32, %arg1: memref<1x4xf32, #tpu.memory_space<smem>>, %arg2: memref<128x32xf32, #tpu.memory_space<vmem>>, %arg3: memref<4x128x16xf32, #tpu.memory_space<vmem>>, %arg4: memref<32x128xf32, #tpu.memory_space<vmem>>, %arg5: memref<16x128xf32, #tpu.memory_space<vmem>>, %arg6: memref<128x128xf32, #tpu.memory_space<vmem>>, %arg7: memref<1x128xf32, #tpu.memory_space<vmem>>, %arg8: memref<128x128xf32, #tpu.memory_space<vmem>>, %arg9: memref<128x128xf32, #tpu.memory_space<vmem>>) attributes {dimension_semantics = [#tpu.dimension_semantics<parallel>], iteration_bounds = array<i64: 2>, scalar_prefetch = 0 : i64, scratch_operands = 0 : i64, tpu.core_type = #tpu.core_type<tc>, window_params = [{transform_indices = @transform_0, window_bounds = array<i64: 1, 4>}, {transform_indices = @transform_1, window_bounds = array<i64: 128, 32>}, {transform_indices = @transform_2, window_bounds = array<i64: 4, 128, 16>}, {pipeline_mode = #tpu.pipeline_mode<synchronous>, transform_indices = @transform_3, window_bounds = array<i64: 32, 128>}, {pipeline_mode = #tpu.pipeline_mode<synchronous>, transform_indices = @transform_4, window_bounds = array<i64: 16, 128>}, {pipeline_mode = #tpu.pipeline_mode<synchronous>, transform_indices = @transform_5, window_bounds = array<i64: 128, 128>}, {pipeline_mode = #tpu.pipeline_mode<synchronous>, transform_indices = @transform_6, window_bounds = array<i64: 1, 128>}, {pipeline_mode = #tpu.pipeline_mode<synchronous>, transform_indices = @transform_7, window_bounds = array<i64: 128, 128>}, {transform_indices = @transform_8, window_bounds = array<i64: 128, 128>}]} {
    %c0 = arith.constant 0 : index
    %c0_0 = arith.constant 0 : index
    %0 = vector.load %arg8[%c0, %c0_0] : memref<128x128xf32, #tpu.memory_space<vmem>>, vector<128x128xf32>
    %c0_1 = arith.constant 0 : index
    %c0_2 = arith.constant 0 : index
    %1 = vector.load %arg2[%c0_1, %c0_2] : memref<128x32xf32, #tpu.memory_space<vmem>>, vector<128x32xf32>
    %c0_3 = arith.constant 0 : index
    %c0_4 = arith.constant 0 : index
    %2 = vector.load %arg4[%c0_3, %c0_4] : memref<32x128xf32, #tpu.memory_space<vmem>>, vector<32x128xf32>
    %cst = arith.constant dense<0.000000e+00> : vector<128x128xf32>
    %3 = tpu.matmul %1, %2, %cst {dimension_numbers = #tpu.dot_dimension_numbers<[1], [0], [0], [1], [0, 0, 1, 1], [], []>} : vector<128x32xf32>, vector<32x128xf32>, vector<128x128xf32> -> vector<128x128xf32>
    %c0_5 = arith.constant 0 : index
    %c0_6 = arith.constant 0 : index
    %c0_7 = arith.constant 0 : index
    %4 = vector.load %arg3[%c0_5, %c0_6, %c0_7] : memref<4x128x16xf32, #tpu.memory_space<vmem>>, vector<1x128x16xf32>
    %5 = vector.shape_cast %4 : vector<1x128x16xf32> to vector<128x16xf32>
    %c0_8 = arith.constant 0 : index
    %c0_9 = arith.constant 0 : index
    %6 = vector.load %arg5[%c0_8, %c0_9] : memref<16x128xf32, #tpu.memory_space<vmem>>, vector<16x128xf32>
    %cst_10 = arith.constant dense<0.000000e+00> : vector<128x128xf32>
    %7 = tpu.matmul %5, %6, %cst_10 {dimension_numbers = #tpu.dot_dimension_numbers<[1], [0], [0], [1], [0, 0, 1, 1], [], []>} : vector<128x16xf32>, vector<16x128xf32>, vector<128x128xf32> -> vector<128x128xf32>
    %c1 = arith.constant 1 : index
    %c0_11 = arith.constant 0 : index
    %c0_12 = arith.constant 0 : index
    %8 = vector.load %arg3[%c1, %c0_11, %c0_12] : memref<4x128x16xf32, #tpu.memory_space<vmem>>, vector<1x128x16xf32>
    %9 = vector.shape_cast %8 : vector<1x128x16xf32> to vector<128x16xf32>
    %c0_13 = arith.constant 0 : index
    %c0_14 = arith.constant 0 : index
    %10 = vector.load %arg5[%c0_13, %c0_14] : memref<16x128xf32, #tpu.memory_space<vmem>>, vector<16x128xf32>
    %cst_15 = arith.constant dense<0.000000e+00> : vector<128x128xf32>
    %11 = tpu.matmul %9, %10, %cst_15 {dimension_numbers = #tpu.dot_dimension_numbers<[1], [0], [0], [1], [0, 0, 1, 1], [], []>} : vector<128x16xf32>, vector<16x128xf32>, vector<128x128xf32> -> vector<128x128xf32>
    %c2 = arith.constant 2 : index
    %c0_16 = arith.constant 0 : index
    %c0_17 = arith.constant 0 : index
    %12 = vector.load %arg3[%c2, %c0_16, %c0_17] : memref<4x128x16xf32, #tpu.memory_space<vmem>>, vector<1x128x16xf32>
    %13 = vector.shape_cast %12 : vector<1x128x16xf32> to vector<128x16xf32>
    %c0_18 = arith.constant 0 : index
    %c0_19 = arith.constant 0 : index
    %14 = vector.load %arg5[%c0_18, %c0_19] : memref<16x128xf32, #tpu.memory_space<vmem>>, vector<16x128xf32>
    %cst_20 = arith.constant dense<0.000000e+00> : vector<128x128xf32>
    %15 = tpu.matmul %13, %14, %cst_20 {dimension_numbers = #tpu.dot_dimension_numbers<[1], [0], [0], [1], [0, 0, 1, 1], [], []>} : vector<128x16xf32>, vector<16x128xf32>, vector<128x128xf32> -> vector<128x128xf32>
    %c3 = arith.constant 3 : index
    %c0_21 = arith.constant 0 : index
    %c0_22 = arith.constant 0 : index
    %16 = vector.load %arg3[%c3, %c0_21, %c0_22] : memref<4x128x16xf32, #tpu.memory_space<vmem>>, vector<1x128x16xf32>
    %17 = vector.shape_cast %16 : vector<1x128x16xf32> to vector<128x16xf32>
    %c0_23 = arith.constant 0 : index
    %c0_24 = arith.constant 0 : index
    %18 = vector.load %arg5[%c0_23, %c0_24] : memref<16x128xf32, #tpu.memory_space<vmem>>, vector<16x128xf32>
    %cst_25 = arith.constant dense<0.000000e+00> : vector<128x128xf32>
    %19 = tpu.matmul %17, %18, %cst_25 {dimension_numbers = #tpu.dot_dimension_numbers<[1], [0], [0], [1], [0, 0, 1, 1], [], []>} : vector<128x16xf32>, vector<16x128xf32>, vector<128x128xf32> -> vector<128x128xf32>
    %20 = arith.mulf %3, %7 : vector<128x128xf32>
    %cst_26 = arith.constant dense<0.000000e+00> : vector<128x128xf32>
    %21 = tpu.matmul %20, %0, %cst_26 {dimension_numbers = #tpu.dot_dimension_numbers<[1], [0], [0], [1], [0, 0, 1, 1], [], []>} : vector<128x128xf32>, vector<128x128xf32>, vector<128x128xf32> -> vector<128x128xf32>
    %c0_27 = arith.constant 0 : index
    %c0_28 = arith.constant 0 : index
    %22 = memref.load %arg1[%c0_27, %c0_28] : memref<1x4xf32, #tpu.memory_space<smem>>
    %23 = vector.broadcast %22 : f32 to vector<128x128xf32>
    %24 = arith.addf %21, %23 : vector<128x128xf32>
    %25 = arith.mulf %3, %11 : vector<128x128xf32>
    %cst_29 = arith.constant dense<0.000000e+00> : vector<128x128xf32>
    %26 = tpu.matmul %25, %0, %cst_29 {dimension_numbers = #tpu.dot_dimension_numbers<[1], [0], [0], [1], [0, 0, 1, 1], [], []>} : vector<128x128xf32>, vector<128x128xf32>, vector<128x128xf32> -> vector<128x128xf32>
    %c0_30 = arith.constant 0 : index
    %c1_31 = arith.constant 1 : index
    %27 = memref.load %arg1[%c0_30, %c1_31] : memref<1x4xf32, #tpu.memory_space<smem>>
    %28 = vector.broadcast %27 : f32 to vector<128x128xf32>
    %29 = arith.addf %26, %28 : vector<128x128xf32>
    %30 = arith.mulf %3, %15 : vector<128x128xf32>
    %cst_32 = arith.constant dense<0.000000e+00> : vector<128x128xf32>
    %31 = tpu.matmul %30, %0, %cst_32 {dimension_numbers = #tpu.dot_dimension_numbers<[1], [0], [0], [1], [0, 0, 1, 1], [], []>} : vector<128x128xf32>, vector<128x128xf32>, vector<128x128xf32> -> vector<128x128xf32>
    %c0_33 = arith.constant 0 : index
    %c2_34 = arith.constant 2 : index
    %32 = memref.load %arg1[%c0_33, %c2_34] : memref<1x4xf32, #tpu.memory_space<smem>>
    %33 = vector.broadcast %32 : f32 to vector<128x128xf32>
    %34 = arith.addf %31, %33 : vector<128x128xf32>
    %35 = arith.mulf %3, %19 : vector<128x128xf32>
    %cst_35 = arith.constant dense<0.000000e+00> : vector<128x128xf32>
    %36 = tpu.matmul %35, %0, %cst_35 {dimension_numbers = #tpu.dot_dimension_numbers<[1], [0], [0], [1], [0, 0, 1, 1], [], []>} : vector<128x128xf32>, vector<128x128xf32>, vector<128x128xf32> -> vector<128x128xf32>
    %c0_36 = arith.constant 0 : index
    %c3_37 = arith.constant 3 : index
    %37 = memref.load %arg1[%c0_36, %c3_37] : memref<1x4xf32, #tpu.memory_space<smem>>
    %38 = vector.broadcast %37 : f32 to vector<128x128xf32>
    %39 = arith.addf %36, %38 : vector<128x128xf32>
    %40 = arith.maximumf %24, %29 : vector<128x128xf32>
    %41 = arith.maximumf %40, %34 : vector<128x128xf32>
    %42 = arith.maximumf %41, %39 : vector<128x128xf32>
    %43 = arith.subf %24, %42 : vector<128x128xf32>
    %44 = math.exp %43 : vector<128x128xf32>
    %45 = arith.subf %29, %42 : vector<128x128xf32>
    %46 = math.exp %45 : vector<128x128xf32>
    %47 = arith.subf %34, %42 : vector<128x128xf32>
    %48 = math.exp %47 : vector<128x128xf32>
    %49 = arith.subf %39, %42 : vector<128x128xf32>
    %50 = math.exp %49 : vector<128x128xf32>
    %51 = arith.addf %44, %46 : vector<128x128xf32>
    %52 = arith.addf %51, %48 : vector<128x128xf32>
    %53 = arith.addf %52, %50 : vector<128x128xf32>
    %54 = tpu.reciprocal %53 {approx = true} : vector<128x128xf32> -> vector<128x128xf32>
    %cst_38 = arith.constant 0.000000e+00 : f32
    %55 = vector.broadcast %cst_38 : f32 to vector<128x128xf32>
    %56 = arith.mulf %44, %54 : vector<128x128xf32>
    %57 = arith.mulf %56, %7 : vector<128x128xf32>
    %58 = arith.addf %55, %57 : vector<128x128xf32>
    %59 = arith.mulf %46, %54 : vector<128x128xf32>
    %60 = arith.mulf %59, %11 : vector<128x128xf32>
    %61 = arith.addf %58, %60 : vector<128x128xf32>
    %62 = arith.mulf %48, %54 : vector<128x128xf32>
    %63 = arith.mulf %62, %15 : vector<128x128xf32>
    %64 = arith.addf %61, %63 : vector<128x128xf32>
    %65 = arith.mulf %50, %54 : vector<128x128xf32>
    %66 = arith.mulf %65, %19 : vector<128x128xf32>
    %67 = arith.addf %64, %66 : vector<128x128xf32>
    %c0_39 = arith.constant 0 : index
    %c0_40 = arith.constant 0 : index
    %68 = vector.load %arg6[%c0_39, %c0_40] : memref<128x128xf32, #tpu.memory_space<vmem>>, vector<128x128xf32>
    %cst_41 = arith.constant dense<0.000000e+00> : vector<128x128xf32>
    %69 = tpu.matmul %67, %68, %cst_41 {dimension_numbers = #tpu.dot_dimension_numbers<[1], [0], [0], [1], [0, 0, 1, 1], [], []>} : vector<128x128xf32>, vector<128x128xf32>, vector<128x128xf32> -> vector<128x128xf32>
    %c0_42 = arith.constant 0 : index
    %c0_43 = arith.constant 0 : index
    %70 = vector.load %arg7[%c0_42, %c0_43] : memref<1x128xf32, #tpu.memory_space<vmem>>, vector<1x128xf32>
    %71 = vector.broadcast %70 : vector<1x128xf32> to vector<128x128xf32>
    %72 = arith.addf %69, %71 : vector<128x128xf32>
    %c0_44 = arith.constant 0 : index
    %c0_45 = arith.constant 0 : index
    %73 = vector.load %arg9[%c0_44, %c0_45] : memref<128x128xf32, #tpu.memory_space<vmem>>, vector<128x128xf32>
    tpu.vector_store %arg9[%c0_44, %c0_45], %72 {strides = array<i32>} : memref<128x128xf32, #tpu.memory_space<vmem>>, vector<128x128xf32>,
    return
  }
  func.func @transform_0(%arg0: i32) -> (i32, i32) {
    %c0_i32 = arith.constant 0 : i32
    %c0_i32_0 = arith.constant 0 : i32
    %c0_i32_1 = arith.constant 0 : i32
    return %c0_i32, %c0_i32_0 : i32, i32
  }
  func.func @transform_1(%arg0: i32) -> (i32, i32) {
    %c0_i32 = arith.constant 0 : i32
    %c0_i32_0 = arith.constant 0 : i32
    return %arg0, %c0_i32 : i32, i32
  }
  func.func @transform_2(%arg0: i32) -> (i32, i32, i32) {
    %c0_i32 = arith.constant 0 : i32
    %c0_i32_0 = arith.constant 0 : i32
    %c0_i32_1 = arith.constant 0 : i32
    return %c0_i32, %arg0, %c0_i32_0 : i32, i32, i32
  }
  func.func @transform_3(%arg0: i32) -> (i32, i32) {
    %c0_i32 = arith.constant 0 : i32
    %c0_i32_0 = arith.constant 0 : i32
    %c0_i32_1 = arith.constant 0 : i32
    return %c0_i32, %c0_i32_0 : i32, i32
  }
  func.func @transform_4(%arg0: i32) -> (i32, i32) {
    %c0_i32 = arith.constant 0 : i32
    %c0_i32_0 = arith.constant 0 : i32
    %c0_i32_1 = arith.constant 0 : i32
    return %c0_i32, %c0_i32_0 : i32, i32
  }
  func.func @transform_5(%arg0: i32) -> (i32, i32) {
    %c0_i32 = arith.constant 0 : i32
    %c0_i32_0 = arith.constant 0 : i32
    %c0_i32_1 = arith.constant 0 : i32
    return %c0_i32, %c0_i32_0 : i32, i32
  }
  func.func @transform_6(%arg0: i32) -> (i32, i32) {
    %c0_i32 = arith.constant 0 : i32
    %c0_i32_0 = arith.constant 0 : i32
    %c0_i32_1 = arith.constant 0 : i32
    return %c0_i32, %c0_i32_0 : i32, i32
  }
  func.func @transform_7(%arg0: i32) -> (i32, i32) {
    %c0_i32 = arith.constant 0 : i32
    %c0_i32_0 = arith.constant 0 : i32
    %c0_i32_1 = arith.constant 0 : i32
    return %c0_i32, %c0_i32_0 : i32, i32
  }
  func.func @transform_8(%arg0: i32) -> (i32, i32) {
    %c0_i32 = arith.constant 0 : i32
    %c0_i32_0 = arith.constant 0 : i32
    return %arg0, %c0_i32 : i32, i32
  }
}

</mosaic_0001>

<bundles_post_ra>
// kernel: tpu_custom_call.1
= control target key start
LH: loop header
LB: loop body
LE: loop exit
PB: predicated region body
PF: predicated region fallthrough
CT: control target
= control target key end

     0   :  { %13 = vsyncpa [#allocation4], 0  ;;  %s6300_s0 = inlined_call_operand.vmem [shape: f32[1,4], index: 0, kind: input, shape index: {}]   ;;  %s6301_s1 = inlined_call_operand.vmem [shape: f32[256,32], index: 1, kind: input, shape index: {}]   ;;  %s6302_s2 = inlined_call_operand.vmem [shape: f32[4,256,16], index: 2, kind: input, shape index: {}]   ;;  %s6303_s3 = inlined_call_operand.vmem [shape: f32[32,128], index: 3, kind: input, shape index: {}]   ;;  %s6304_s4 = inlined_call_operand.vmem [shape: f32[16,128], index: 4, kind: input, shape index: {}]   ;;  %s6305_s5 = inlined_call_operand.vmem [shape: f32[128,128], index: 5, kind: input, shape index: {}]   ;;  %s6306_s6 = inlined_call_operand.vmem [shape: f32[1,128], index: 6, kind: input, shape index: {}]   ;;  %s6307_s7 = inlined_call_operand.vmem [shape: f32[128,128], index: 7, kind: input, shape index: {}]   ;;  %s6308_s8 = inlined_call_operand.hbm [shape: f32[256,128], index: 8, kind: output, shape index: {}]  }
   0x1   :  { %14 = vsyncpa [#allocation3], 0 }
   0x2   :  { %16 = vsyncpa [#allocation3 + $0x1], 0  ;;  %s4495_s27 = smov 0   ;;  %s4497_s28 = smov 0  }
   0x3   :  { %s4499_s29 = smov 0   ;;  %s4501_s30 = smov 0  }
   0x4 LB: > { %s4516_s9 = sadd.s32 4294967295, %s4444_s30   ;;  %s3139_s10 = sadd.s32 4294967294, %s4444_s30   ;;  %s4444_s30 = sphi %s4501_s30, %s6598_s30   ;;  %s4440_s29 = sphi %s4499_s29, %s6597_s29   ;;  %s4436_s28 = sphi %s4497_s28, %s6596_s28   ;;  %s4432_s27 = sphi %s4495_s27, %s6595_s27  }
   0x5   : > { %s4520_s11 = sadd.s32 1, %s4444_s30   ;;  %s76_s12 = sadd.s32 1, %s4440_s29 }
   0x6   : > { %s73_s13 = ssub.s32 %s4444_s30, %s4520_s11  ;;  %p83_p0 = scmp.ne.s32.totalorder %s4440_s29, %s4436_s28 }
   0x7   : > { %p74_p1 = scmp.eq.s32.totalorder %s73_s13, 0  ;;  %p84_p2 = scmp.eq.s32.totalorder %s4444_s30, 0 }
   0x8   : > { %p218_p3 = scmp.eq.s32.totalorder %s4516_s9, 1  ;;  %p223_p4 = scmp.ne.s32.totalorder %s4436_s28, %s4432_s27 }
   0x9   : > { %s4532_s14 = scalar_select %p74_p1, %s4440_s29, %s76_s12  }
   0xa   : > { %p4534_p5 = por %p84_p2, %p83_p0  ;;  %p4538_p6 = por %p218_p3, %p83_p0 }
   0xb   : > { %p224_p7 = scmp.eq.s32.totalorder %s3139_s10, 1  ;;  %p3140_p8 = scmp.ge.s32.totalorder %s4444_s30, 1 }
   0xc   : > { %s6402_s16 = scalar_select %p4538_p6, 1, 0 }
   0xd   : > { %p231_p9 = scmp.lt.s32.totalorder %s4444_s30, 3  ;;  %p4544_p10 = por %p224_p7, %p223_p4 }
   0xe   : > { %p4165_p11 = scmp.eq.s32.totalorder %s4516_s9, 0  ;;  %s244_s21 = sshll.u32 %s6300_s0, 4  ;;  %s245_s21 = int_to_ptr.vmem [resolvable:$true] %s244_s21 }
   0xf   : > { %s6403_s17 = scalar_select %p4544_p10, 1, 0 }
  0x10   : > { %p4549_p12 = pnand %p3140_p8, %p231_p9  ;;  %s4363_s22 = scalar_lea.vmem %s245_s21, 16 }
  0x11   : > { %p4364_p1 = scmp.ne.s32.totalorder %s245_s21, %s4363_s22  ;;  %p4371_p7 = scmp.lt.s32.totalorder %s245_s21, %s245_s21 }
  0x12   : > { %p4157_p13 = pneg %p4549_p12  ;;  %p4372_p8 = scmp.lt.s32.totalorder %s4363_s22, %s4363_s22 }
  0x14   : > { %p4158_p0 = pnand %p4165_p11, %p4157_p13  ;;  %p4373_p9 = por %p4372_p8, %p4371_p7 }
  0x16   : > { %p4365_p2 = pneg %p4158_p0 }
  0x18   : > { %p4366_p3 = pnand %p4365_p2, %p4364_p1 }
  0x1a   : > { %p4367_p4 = pneg %p4366_p3 }
  0x1c   : > { %p4374_p10 = pnand %p4373_p9, %p4367_p4 }
  0x1e   : > { %4377 = shalt.err (!%p4374_p10)
}
  0x1f   : > { %s4446_s23 = smov [#allocation2]   ;;  %p3142_p6 = scmp.ge.s32.totalorder %s4444_s30, 2 }
  0x20   : > { %4160 = dma.vmem_to_smem (!%p4158_p0), %s245_s21, 16, %s4446_s23, [#allocation4]  }
  0x21   : > { %266 = sbr.rel (%p3142_p6) target bundleno = 76 (0x4c), region = 40 }
  0x28   : > { %278 = sbr.rel (!%p4534_p5) target bundleno = 76 (0x4c), region = 48  ;;  %s280_s24 = sand.u32 (%p4534_p5), 1, %s4440_s29  }
  0x29   : > { %s3289_s25 = sshll.u32 (%p4534_p5), %s4444_s30, 7  ;;  %s3143_s26 = sshll.u32 (%p4534_p5), %s280_s24, 9 }
  0x2a   : > { %s4570_s13 = scalar_lea.vmem (%p4534_p5), %s6302_s2, %s3289_s25  ;;  %s4575_s15 = scalar_lea.vmem (%p4534_p5), [#allocation5], %s3143_s26 }
  0x2b   : > { %v439_v0 = vld [vmem:[%s4570_s13] sm:$0xff] (%p4534_p5)  ;;  %v441_v1 = vld [vmem:[%s4570_s13 + $0x8] sm:$0xff] (%p4534_p5)  ;;  %v443_v2 = vld [vmem:[%s4570_s13 + $0x10] sm:$0xff] (%p4534_p5) }
  0x2c   : > { %440 = vst [vmem:[%s4575_s15] sm:$0xff] (%p4534_p5), %v439_v0  ;;  %442 = vst [vmem:[%s4575_s15 + $0x8] sm:$0xff] (%p4534_p5), %v441_v1  ;;  %v445_v3 = vld [vmem:[%s4570_s13 + $0x18] sm:$0xff] (%p4534_p5)  ;;  %v447_v4 = vld [vmem:[%s4570_s13 + $0x20] sm:$0xff] (%p4534_p5) }
  0x2d   : > { %444 = vst [vmem:[%s4575_s15 + $0x10] sm:$0xff] (%p4534_p5), %v443_v2  ;;  %v449_v5 = vld [vmem:[%s4570_s13 + $0x28] sm:$0xff] (%p4534_p5)  ;;  %446 = vst [vmem:[%s4575_s15 + $0x18] sm:$0xff] (%p4534_p5), %v445_v3  ;;  %v451_v6 = vld [vmem:[%s4570_s13 + $0x30] sm:$0xff] (%p4534_p5) }
  0x2e   : > { %448 = vst [vmem:[%s4575_s15 + $0x20] sm:$0xff] (%p4534_p5), %v447_v4  ;;  %450 = vst [vmem:[%s4575_s15 + $0x28] sm:$0xff] (%p4534_p5), %v449_v5  ;;  %v453_v7 = vld [vmem:[%s4570_s13 + $0x38] sm:$0xff] (%p4534_p5)  ;;  %v455_v8 = vld [vmem:[%s4570_s13 + $0x40] sm:$0xff] (%p4534_p5) }
  0x2f   : > { %452 = vst [vmem:[%s4575_s15 + $0x30] sm:$0xff] %v451_v6  ;;  %454 = vst [vmem:[%s4575_s15 + $0x38] sm:$0xff] %v453_v7  ;;  %v457_v9 = vld [vmem:[%s4570_s13 + $0x48] sm:$0xff]  ;;  %v459_v10 = vld [vmem:[%s4570_s13 + $0x50] sm:$0xff] }
  0x30   : > { %456 = vst [vmem:[%s4575_s15 + $0x40] sm:$0xff] %v455_v8  ;;  %v461_v11 = vld [vmem:[%s4570_s13 + $0x58] sm:$0xff]  ;;  %458 = vst [vmem:[%s4575_s15 + $0x48] sm:$0xff] %v457_v9  ;;  %v463_v12 = vld [vmem:[%s4570_s13 + $0x60] sm:$0xff] }
  0x31   : > { %460 = vst [vmem:[%s4575_s15 + $0x50] sm:$0xff] %v459_v10  ;;  %462 = vst [vmem:[%s4575_s15 + $0x58] sm:$0xff] %v461_v11  ;;  %v465_v13 = vld [vmem:[%s4570_s13 + $0x68] sm:$0xff]  ;;  %v467_v14 = vld [vmem:[%s4570_s13 + $0x70] sm:$0xff] }
  0x32   : > { %464 = vst [vmem:[%s4575_s15 + $0x60] sm:$0xff] %v463_v12  ;;  %466 = vst [vmem:[%s4575_s15 + $0x68] sm:$0xff] %v465_v13  ;;  %v469_v15 = vld [vmem:[%s4570_s13 + $0x78] sm:$0xff]  ;;  %v471_v16 = vld [vmem:[%s4570_s13 + $0x100] sm:$0xff] }
  0x33   : > { %468 = vst [vmem:[%s4575_s15 + $0x70] sm:$0xff] %v467_v14  ;;  %v473_v17 = vld [vmem:[%s4570_s13 + $0x108] sm:$0xff]  ;;  %470 = vst [vmem:[%s4575_s15 + $0x78] sm:$0xff] %v469_v15  ;;  %v475_v18 = vld [vmem:[%s4570_s13 + $0x110] sm:$0xff] }
  0x34   : > { %472 = vst [vmem:[%s4575_s15 + $0x80] sm:$0xff] %v471_v16  ;;  %474 = vst [vmem:[%s4575_s15 + $0x88] sm:$0xff] %v473_v17  ;;  %v477_v19 = vld [vmem:[%s4570_s13 + $0x118] sm:$0xff]  ;;  %v479_v20 = vld [vmem:[%s4570_s13 + $0x120] sm:$0xff] }
  0x35   : > { %476 = vst [vmem:[%s4575_s15 + $0x90] sm:$0xff] %v475_v18  ;;  %478 = vst [vmem:[%s4575_s15 + $0x98] sm:$0xff] %v477_v19  ;;  %v481_v21 = vld [vmem:[%s4570_s13 + $0x128] sm:$0xff]  ;;  %v483_v22 = vld [vmem:[%s4570_s13 + $0x130] sm:$0xff] }
  0x36   : > { %480 = vst [vmem:[%s4575_s15 + $0xa0] sm:$0xff] %v479_v20  ;;  %v485_v23 = vld [vmem:[%s4570_s13 + $0x138] sm:$0xff]  ;;  %482 = vst [vmem:[%s4575_s15 + $0xa8] sm:$0xff] %v481_v21  ;;  %v487_v24 = vld [vmem:[%s4570_s13 + $0x140] sm:$0xff] }
  0x37   : > { %484 = vst [vmem:[%s4575_s15 + $0xb0] sm:$0xff] %v483_v22  ;;  %486 = vst [vmem:[%s4575_s15 + $0xb8] sm:$0xff] %v485_v23  ;;  %v489_v25 = vld [vmem:[%s4570_s13 + $0x148] sm:$0xff]  ;;  %v491_v26 = vld [vmem:[%s4570_s13 + $0x150] sm:$0xff] }
  0x38   : > { %488 = vst [vmem:[%s4575_s15 + $0xc0] sm:$0xff] %v487_v24  ;;  %490 = vst [vmem:[%s4575_s15 + $0xc8] sm:$0xff] %v489_v25  ;;  %v493_v27 = vld [vmem:[%s4570_s13 + $0x158] sm:$0xff]  ;;  %v495_v28 = vld [vmem:[%s4570_s13 + $0x160] sm:$0xff] }
  0x39   : > { %492 = vst [vmem:[%s4575_s15 + $0xd0] sm:$0xff] %v491_v26  ;;  %v497_v29 = vld [vmem:[%s4570_s13 + $0x168] sm:$0xff]  ;;  %494 = vst [vmem:[%s4575_s15 + $0xd8] sm:$0xff] %v493_v27  ;;  %v499_v30 = vld [vmem:[%s4570_s13 + $0x170] sm:$0xff] }
  0x3a   : > { %496 = vst [vmem:[%s4575_s15 + $0xe0] sm:$0xff] %v495_v28  ;;  %498 = vst [vmem:[%s4575_s15 + $0xe8] sm:$0xff] %v497_v29  ;;  %v501_v31 = vld [vmem:[%s4570_s13 + $0x178] sm:$0xff]  ;;  %v503_v32 = vld [vmem:[%s4570_s13 + $0x200] sm:$0xff] }
  0x3b   : > { %500 = vst [vmem:[%s4575_s15 + $0xf0] sm:$0xff] %v499_v30  ;;  %502 = vst [vmem:[%s4575_s15 + $0xf8] sm:$0xff] %v501_v31  ;;  %v505_v33 = vld [vmem:[%s4570_s13 + $0x208] sm:$0xff]  ;;  %v507_v34 = vld [vmem:[%s4570_s13 + $0x210] sm:$0xff] }
  0x3c   : > { %504 = vst [vmem:[%s4575_s15 + $0x100] sm:$0xff] %v503_v32  ;;  %v509_v35 = vld [vmem:[%s4570_s13 + $0x218] sm:$0xff]  ;;  %506 = vst [vmem:[%s4575_s15 + $0x108] sm:$0xff] %v505_v33  ;;  %v511_v36 = vld [vmem:[%s4570_s13 + $0x220] sm:$0xff] }
  0x3d   : > { %508 = vst [vmem:[%s4575_s15 + $0x110] sm:$0xff] %v507_v34  ;;  %510 = vst [vmem:[%s4575_s15 + $0x118] sm:$0xff] %v509_v35  ;;  %v513_v37 = vld [vmem:[%s4570_s13 + $0x228] sm:$0xff]  ;;  %v515_v38 = vld [vmem:[%s4570_s13 + $0x230] sm:$0xff] }
  0x3e   : > { %512 = vst [vmem:[%s4575_s15 + $0x120] sm:$0xff] %v511_v36  ;;  %514 = vst [vmem:[%s4575_s15 + $0x128] sm:$0xff] %v513_v37  ;;  %v517_v39 = vld [vmem:[%s4570_s13 + $0x238] sm:$0xff]  ;;  %v519_v40 = vld [vmem:[%s4570_s13 + $0x240] sm:$0xff] }
  0x3f   : > { %516 = vst [vmem:[%s4575_s15 + $0x130] sm:$0xff] %v515_v38  ;;  %v521_v41 = vld [vmem:[%s4570_s13 + $0x248] sm:$0xff]  ;;  %518 = vst [vmem:[%s4575_s15 + $0x138] sm:$0xff] %v517_v39  ;;  %v523_v42 = vld [vmem:[%s4570_s13 + $0x250] sm:$0xff] }
  0x40   : > { %520 = vst [vmem:[%s4575_s15 + $0x140] sm:$0xff] %v519_v40  ;;  %522 = vst [vmem:[%s4575_s15 + $0x148] sm:$0xff] %v521_v41  ;;  %v525_v43 = vld [vmem:[%s4570_s13 + $0x258] sm:$0xff]  ;;  %v527_v44 = vld [vmem:[%s4570_s13 + $0x260] sm:$0xff] }
  0x41   : > { %524 = vst [vmem:[%s4575_s15 + $0x150] sm:$0xff] %v523_v42  ;;  %526 = vst [vmem:[%s4575_s15 + $0x158] sm:$0xff] %v525_v43  ;;  %v529_v45 = vld [vmem:[%s4570_s13 + $0x268] sm:$0xff]  ;;  %v531_v46 = vld [vmem:[%s4570_s13 + $0x270] sm:$0xff] }
  0x42   : > { %528 = vst [vmem:[%s4575_s15 + $0x160] sm:$0xff] %v527_v44  ;;  %v533_v47 = vld [vmem:[%s4570_s13 + $0x278] sm:$0xff]  ;;  %530 = vst [vmem:[%s4575_s15 + $0x168] sm:$0xff] %v529_v45  ;;  %v535_v48 = vld [vmem:[%s4570_s13 + $0x300] sm:$0xff] }
  0x43   : > { %532 = vst [vmem:[%s4575_s15 + $0x170] sm:$0xff] %v531_v46  ;;  %534 = vst [vmem:[%s4575_s15 + $0x178] sm:$0xff] %v533_v47  ;;  %v537_v49 = vld [vmem:[%s4570_s13 + $0x308] sm:$0xff]  ;;  %v539_v50 = vld [vmem:[%s4570_s13 + $0x310] sm:$0xff] }
  0x44   : > { %536 = vst [vmem:[%s4575_s15 + $0x180] sm:$0xff] %v535_v48  ;;  %538 = vst [vmem:[%s4575_s15 + $0x188] sm:$0xff] %v537_v49  ;;  %v541_v51 = vld [vmem:[%s4570_s13 + $0x318] sm:$0xff]  ;;  %v543_v52 = vld [vmem:[%s4570_s13 + $0x320] sm:$0xff] }
  0x45   : > { %540 = vst [vmem:[%s4575_s15 + $0x190] sm:$0xff] %v539_v50  ;;  %v545_v53 = vld [vmem:[%s4570_s13 + $0x328] sm:$0xff]  ;;  %542 = vst [vmem:[%s4575_s15 + $0x198] sm:$0xff] %v541_v51  ;;  %v547_v54 = vld [vmem:[%s4570_s13 + $0x330] sm:$0xff] }
  0x46   : > { %544 = vst [vmem:[%s4575_s15 + $0x1a0] sm:$0xff] %v543_v52  ;;  %546 = vst [vmem:[%s4575_s15 + $0x1a8] sm:$0xff] %v545_v53  ;;  %v549_v55 = vld [vmem:[%s4570_s13 + $0x338] sm:$0xff]  ;;  %v551_v56 = vld [vmem:[%s4570_s13 + $0x340] sm:$0xff] }
  0x47   : > { %548 = vst [vmem:[%s4575_s15 + $0x1b0] sm:$0xff] %v547_v54  ;;  %550 = vst [vmem:[%s4575_s15 + $0x1b8] sm:$0xff] %v549_v55  ;;  %v553_v57 = vld [vmem:[%s4570_s13 + $0x348] sm:$0xff]  ;;  %v555_v58 = vld [vmem:[%s4570_s13 + $0x350] sm:$0xff] }
  0x48   : > { %552 = vst [vmem:[%s4575_s15 + $0x1c0] sm:$0xff] %v551_v56  ;;  %v557_v59 = vld [vmem:[%s4570_s13 + $0x358] sm:$0xff]  ;;  %554 = vst [vmem:[%s4575_s15 + $0x1c8] sm:$0xff] %v553_v57  ;;  %v559_v60 = vld [vmem:[%s4570_s13 + $0x360] sm:$0xff] }
  0x49   : > { %556 = vst [vmem:[%s4575_s15 + $0x1d0] sm:$0xff] %v555_v58  ;;  %558 = vst [vmem:[%s4575_s15 + $0x1d8] sm:$0xff] %v557_v59  ;;  %v561_v61 = vld [vmem:[%s4570_s13 + $0x368] sm:$0xff]  ;;  %v563_v62 = vld [vmem:[%s4570_s13 + $0x370] sm:$0xff] }
  0x4a   : > { %560 = vst [vmem:[%s4575_s15 + $0x1e0] sm:$0xff] %v559_v60  ;;  %562 = vst [vmem:[%s4575_s15 + $0x1e8] sm:$0xff] %v561_v61  ;;  %v565_v63 = vld [vmem:[%s4570_s13 + $0x378] sm:$0xff] }
  0x4b   : > { %564 = vst [vmem:[%s4575_s15 + $0x1f0] sm:$0xff] %v563_v62  ;;  %566 = vst [vmem:[%s4575_s15 + $0x1f8] sm:$0xff] %v565_v63 }
  0x4c PF: > { %575 = sbr.rel (%p4549_p12) target bundleno = 943 (0x3af), region = 86 }
  0x53   : > { %4423 = dma.done.wait (%p4165_p11), [#allocation4], 16  }
  0x54   : > { %4425 = vsyncadd (%p4165_p11), [#allocation4], 4294967280  ;;  %s4709_s19 = sand.u32 1, %s4436_s28  }
  0x55   : > { %s3148_s20 = sshll.u32 %s4709_s19, 9 }
  0x56   : > { %s4712_s21 = scalar_lea.vmem [#allocation5], %s3148_s20 }
  0x57   : > { %588 = sfence }
  0x58   : > { %v661_v0 = vld [vmem:[%s6303_s3] sm:$0xff]  ;;  %v662_v1 = vld [vmem:[%s6303_s3 + $0x8] sm:$0xff]  ;;  %vm877_vm0 = vcmask 130048   ;;  %s3150_s10 = sshll.u32 %s4516_s9, 4  ;;  %v663_v6 = vld [vmem:[%s6303_s3 + $0x10] sm:$0xff]  ;;  %vm665_vm1 = vcmask 261120  }
  0x59   : > { %v875_v2 = vld [vmem:[%s6304_s4] sm:$0xff]  ;;  %v3967_v3 = vpack.c.bf16 %v662_v1, %v661_v0  ;;  %v876_v4 = vld [vmem:[%s6304_s4 + $0x8] sm:$0xff]  ;;  %p622_p5 = scmp.lt.s32.totalorder %s3150_s10, 31  ;;  %v664_v8 = vld [vmem:[%s6303_s3 + $0x18] sm:$0xff]  ;;  %s1717_s13 = sld [smem:[#allocation2]] }
  0x5a   : > { %v859_v5 = vld [vmem:[%s4712_s21] sm:$0xff]  ;;  %v4731_v7 = vpack.c.bf16 %v876_v4, %v875_v2  ;;  %v3971_v9 = vpack.c.bf16 %v664_v8, %v663_v6  ;;  %v860_v10 = vld [vmem:[%s4712_s21 + $0x8] sm:$0xff]  ;;  %v861_v12 = vld [vmem:[%s4712_s21 + $0x10] sm:$0xff]  ;;  %s3280_s15 = sld [smem:[#allocation2 + $0x1]]  ;;  %s3281_s20 = sld [smem:[#allocation2 + $0x2]] }
  0x5b   : > { %3579 = vmatprep.mubr.msk.f32.mxu1 %vm877_vm0, %v859_v5  ;;  %3968 = vmatprep.subr.bf16.mxu0 %v3967_v3  ;;  %s6600_s10 = smov (!%p622_p5, %s3150_s10), 31  ;;  %v862_v14 = vld [vmem:[%s4712_s21 + $0x18] sm:$0xff]  ;;  %v863_v16 = vld [vmem:[%s4712_s21 + $0x20] sm:$0xff]  ;;  %v864_v18 = vld [vmem:[%s4712_s21 + $0x28] sm:$0xff]  ;;  %s3282_s25 = sld [smem:[#allocation2 + $0x3]] }
  0x5c   : > { %3976 = vmatprep.subr.bf16.mxu1 %v4731_v7  ;;  %3970 = vmatpush3.bf16.msra.mxu0 %v3967_v3  ;;  %s3151_s18 = sshll.u32 %s6600_s10, 3  ;;  %v865_v20 = vld [vmem:[%s4712_s21 + $0x30] sm:$0xff]  ;;  %v866_v22 = vld [vmem:[%s4712_s21 + $0x38] sm:$0xff]  ;;  %v867_v24 = vld [vmem:[%s4712_s21 + $0x40] sm:$0xff]  ;;  %p6593_p11 = scmp.ne.s32.totalorder %s6402_s16, 0 }
  0x5d   : > { %3978 = vmatpush3.bf16.msra.mxu1 %v4731_v7  ;;  %3972 = vmatprep.subr.bf16.mxu0 %v3971_v9  ;;  %s4744_s26 = scalar_lea.vmem %s6301_s1, %s3151_s18  ;;  %v868_v26 = vld [vmem:[%s4712_s21 + $0x48] sm:$0xff]  ;;  %v869_v28 = vld [vmem:[%s4712_s21 + $0x50] sm:$0xff]  ;;  %v870_v30 = vld [vmem:[%s4712_s21 + $0x58] sm:$0xff]  ;;  %s3034_s18 = scalar_lea.sflag [#allocation3], %s4709_s19 }
  0x5e   : > { %3980 = vmatprep.subr.bf16.mxu1 %v4731_v7  ;;  %v645_v11 = vld [vmem:[%s4744_s26] sm:$0xff]  ;;  %v646_v13 = vld [vmem:[%s4744_s26 + $0x8] sm:$0xff]  ;;  %v647_v15 = vld [vmem:[%s4744_s26 + $0x10] sm:$0xff] }
  0x5f   : > { %3551 = vmatprep.mubr.msk.f32.mxu0 %vm665_vm1, %v645_v11  ;;  %v648_v17 = vld [vmem:[%s4744_s26 + $0x18] sm:$0xff]  ;;  %v649_v19 = vld [vmem:[%s4744_s26 + $0x20] sm:$0xff]  ;;  %v650_v21 = vld [vmem:[%s4744_s26 + $0x28] sm:$0xff] }
  0x60   : > { %3580 = vmatmul.mubr.msk.f32.vlgmr.msra.gmra.mrb[0].mxu1 %vm877_vm0, %v860_v10  ;;  %3974 = vmatpush3.bf16.msra.mxu0 %v3971_v9  ;;  %v651_v23 = vld [vmem:[%s4744_s26 + $0x30] sm:$0xff]  ;;  %v652_v25 = vld [vmem:[%s4744_s26 + $0x38] sm:$0xff]  ;;  %v653_v27 = vld [vmem:[%s4744_s26 + $0x40] sm:$0xff] }
  0x61   : > { %3982 = vmatpush3.bf16.msra.mxu1 %v4731_v7  ;;  %3582 = vmatprep.mubr.msk.f32.mxu1 %vm877_vm0, %v861_v12  ;;  %v654_v29 = vld [vmem:[%s4744_s26 + $0x48] sm:$0xff]  ;;  %v655_v31 = vld [vmem:[%s4744_s26 + $0x50] sm:$0xff]  ;;  %v871_v32 = vld [vmem:[%s4712_s21 + $0x60] sm:$0xff] }
  0x62   : > { %3984 = vmatprep.subr.bf16.mxu0 %v4731_v7  ;;  %3988 = vmatprep.subr.bf16.mxu1 %v4731_v7  ;;  %v656_v33 = vld [vmem:[%s4744_s26 + $0x58] sm:$0xff]  ;;  %v629_v34 = vld [vmem:[%s6307_s7] sm:$0xff]  ;;  %v872_v35 = vld [vmem:[%s4712_s21 + $0x68] sm:$0xff] }
  0x63   : > { %3552 = vmatmul.mubr.msk.f32.vlgmr.msra.gmra.mrb[0].mxu0 %vm665_vm1, %v646_v13  ;;  %v657_v36 = vld [vmem:[%s4744_s26 + $0x60] sm:$0xff]  ;;  %v630_v37 = vld [vmem:[%s6307_s7 + $0x8] sm:$0xff]  ;;  %v873_v38 = vld [vmem:[%s4712_s21 + $0x70] sm:$0xff] }
  0x64   : > { %3583 = vmatmul.mubr.msk.f32.gmra.mrb[2].mxu1 %vm877_vm0, %v862_v14  ;;  %3554 = vmatprep.mubr.msk.f32.mxu0 %vm665_vm1, %v647_v15  ;;  %v4805_v39 = vpack.c.bf16 %v630_v37, %v629_v34  ;;  %v658_v40 = vld [vmem:[%s4744_s26 + $0x68] sm:$0xff]  ;;  %v874_v41 = vld [vmem:[%s4712_s21 + $0x78] sm:$0xff]  ;;  %v659_v42 = vld [vmem:[%s4744_s26 + $0x70] sm:$0xff] }
  0x65   : > { %3585 = vmatprep.mubr.msk.f32.mxu1 %vm877_vm0, %v863_v16  ;;  %3986 = vmatpush3.bf16.msra.mxu0 %v4731_v7  ;;  %v3184_v43 = vld [vmem:[%s4712_s21 + $0x80] sm:$0xff]  ;;  %v660_v44 = vld [vmem:[%s4744_s26 + $0x78] sm:$0xff]  ;;  %v3185_v45 = vld [vmem:[%s4712_s21 + $0x88] sm:$0xff] }
  0x66   : > { %3992 = vmatprep.subr.bf16.mxu0 %v4805_v39  ;;  %v3216_v46 = vld [vmem:[%s4712_s21 + $0x100] sm:$0xff]  ;;  %v3186_v47 = vld [vmem:[%s4712_s21 + $0x90] sm:$0xff]  ;;  %v632_v49 = vld [vmem:[%s6307_s7 + $0x18] sm:$0xff] }
  0x67   : > { %3555 = vmatmul.mubr.msk.f32.gmra.mrb[2].mxu0 %vm665_vm1, %v648_v17  ;;  %v631_v48 = vld [vmem:[%s6307_s7 + $0x10] sm:$0xff]  ;;  %v3217_v50 = vld [vmem:[%s4712_s21 + $0x108] sm:$0xff]  ;;  %v3187_v51 = vld [vmem:[%s4712_s21 + $0x98] sm:$0xff] }
  0x68   : > { %3586 = vmatmul.mubr.msk.f32.gmra.mrb[4].mxu1 %vm877_vm0, %v864_v18  ;;  %3557 = vmatprep.mubr.msk.f32.mxu0 %vm665_vm1, %v649_v19  ;;  %v3218_v52 = vld [vmem:[%s4712_s21 + $0x110] sm:$0xff]  ;;  %v3188_v53 = vld [vmem:[%s4712_s21 + $0xa0] sm:$0xff]  ;;  %v4839_v54 = vpack.c.bf16 %v632_v49, %v631_v48  ;;  %v634_v56 = vld [vmem:[%s6307_s7 + $0x28] sm:$0xff] }
  0x69   : > { %3588 = vmatprep.mubr.msk.f32.mxu1 %vm877_vm0, %v865_v20  ;;  %v633_v55 = vld [vmem:[%s6307_s7 + $0x20] sm:$0xff]  ;;  %v3219_v57 = vld [vmem:[%s4712_s21 + $0x118] sm:$0xff]  ;;  %v3189_v58 = vld [vmem:[%s4712_s21 + $0xa8] sm:$0xff] }
  0x6a   : > { %v3220_v59 = vld [vmem:[%s4712_s21 + $0x120] sm:$0xff]  ;;  %v3190_v60 = vld [vmem:[%s4712_s21 + $0xb0] sm:$0xff]  ;;  %v4858_v61 = vpack.c.bf16 %v634_v56, %v633_v55  ;;  %v636_v63 = vld [vmem:[%s6307_s7 + $0x38] sm:$0xff] }
  0x6b   : > { %3558 = vmatmul.mubr.msk.f32.gmra.mrb[4].mxu0 %vm665_vm1, %v650_v21  ;;  %v635_v62 = vld [vmem:[%s6307_s7 + $0x30] sm:$0xff]  ;;  %v3221_v0 = vld [vmem:[%s4712_s21 + $0x128] sm:$0xff]  ;;  %v3191_v1 = vld [vmem:[%s4712_s21 + $0xb8] sm:$0xff] }
  0x6c   : > { %3589 = vmatmul.mubr.msk.f32.gmra.mrb[6].mxu1 %vm877_vm0, %v866_v22  ;;  %3560 = vmatprep.mubr.msk.f32.mxu0 %vm665_vm1, %v651_v23  ;;  %v3222_v2 = vld [vmem:[%s4712_s21 + $0x130] sm:$0xff]  ;;  %v3192_v3 = vld [vmem:[%s4712_s21 + $0xc0] sm:$0xff]  ;;  %v4876_v4 = vpack.c.bf16 %v636_v63, %v635_v62  ;;  %v638_v6 = vld [vmem:[%s6307_s7 + $0x48] sm:$0xff] }
  0x6d   : > { %3591 = vmatprep.mubr.msk.f32.mxu1 %vm877_vm0, %v867_v24  ;;  %v637_v5 = vld [vmem:[%s6307_s7 + $0x40] sm:$0xff]  ;;  %v3193_v8 = vld [vmem:[%s4712_s21 + $0xc8] sm:$0xff]  ;;  %v3194_v10 = vld [vmem:[%s4712_s21 + $0xd0] sm:$0xff] }
  0x6e   : > { %v3224_v9 = vld [vmem:[%s4712_s21 + $0x140] sm:$0xff]  ;;  %v4894_v11 = vpack.c.bf16 %v638_v6, %v637_v5  ;;  %v639_v12 = vld [vmem:[%s6307_s7 + $0x50] sm:$0xff]  ;;  %v640_v13 = vld [vmem:[%s6307_s7 + $0x58] sm:$0xff] }
  0x6f   : > { %3561 = vmatmul.mubr.msk.f32.gmra.mrb[6].mxu0 %vm665_vm1, %v652_v25  ;;  %v3225_v14 = vld [vmem:[%s4712_s21 + $0x148] sm:$0xff]  ;;  %v3195_v15 = vld [vmem:[%s4712_s21 + $0xd8] sm:$0xff]  ;;  %v3226_v16 = vld [vmem:[%s4712_s21 + $0x150] sm:$0xff]  ;;  %v4912_v18 = vpack.c.bf16 %v640_v13, %v639_v12 }
  0x70   : > { %3592 = vmatmul.mubr.msk.f32.gmra.mrb[8].mxu1 %vm877_vm0, %v868_v26  ;;  %3563 = vmatprep.mubr.msk.f32.mxu0 %vm665_vm1, %v653_v27  ;;  %v3196_v17 = vld [vmem:[%s4712_s21 + $0xe0] sm:$0xff]  ;;  %v3227_v19 = vld [vmem:[%s4712_s21 + $0x158] sm:$0xff]  ;;  %v3197_v20 = vld [vmem:[%s4712_s21 + $0xe8] sm:$0xff] }
  0x71   : > { %3594 = vmatprep.mubr.msk.f32.mxu1 %vm877_vm0, %v869_v28  ;;  %v3228_v21 = vld [vmem:[%s4712_s21 + $0x160] sm:$0xff]  ;;  %v3198_v22 = vld [vmem:[%s4712_s21 + $0xf0] sm:$0xff]  ;;  %v3229_v23 = vld [vmem:[%s4712_s21 + $0x168] sm:$0xff] }
  0x72   : > { %v3199_v24 = vld [vmem:[%s4712_s21 + $0xf8] sm:$0xff]  ;;  %v3230_v25 = vld [vmem:[%s4712_s21 + $0x170] sm:$0xff]  ;;  %v3248_v26 = vld [vmem:[%s4712_s21 + $0x180] sm:$0xff] }
  0x73   : > { %3564 = vmatmul.mubr.msk.f32.gmra.mrb[8].mxu0 %vm665_vm1, %v654_v29  ;;  %v3231_v27 = vld [vmem:[%s4712_s21 + $0x178] sm:$0xff]  ;;  %v3249_v28 = vld [vmem:[%s4712_s21 + $0x188] sm:$0xff]  ;;  %v3250_v29 = vld [vmem:[%s4712_s21 + $0x190] sm:$0xff] }
  0x74   : > { %3595 = vmatmul.mubr.msk.f32.gmra.mrb[10].mxu1 %vm877_vm0, %v870_v30  ;;  %3566 = vmatprep.mubr.msk.f32.mxu0 %vm665_vm1, %v655_v31  ;;  %v3251_v30 = vld [vmem:[%s4712_s21 + $0x198] sm:$0xff]  ;;  %v3252_v31 = vld [vmem:[%s4712_s21 + $0x1a0] sm:$0xff]  ;;  %v3258_v37 = vld [vmem:[%s4712_s21 + $0x1d0] sm:$0xff] }
  0x75   : > { %3597 = vmatprep.mubr.msk.f32.mxu1 %vm877_vm0, %v871_v32  ;;  %v3253_v32 = vld [vmem:[%s4712_s21 + $0x1a8] sm:$0xff]  ;;  %v3255_v34 = vld [vmem:[%s4712_s21 + $0x1b8] sm:$0xff] }
  0x76   : > { %v3263_v49 = vld [vmem:[%s4712_s21 + $0x1f8] sm:$0xff] }
  0x77   : > { %3567 = vmatmul.mubr.msk.f32.gmra.mrb[10].mxu0 %vm665_vm1, %v656_v33  ;;  %v3254_v33 = vld [vmem:[%s4712_s21 + $0x1b0] sm:$0xff] }
  0x78   : > { %3598 = vmatmul.mubr.msk.f32.gmra.mrb[12].mxu1 %vm877_vm0, %v872_v35  ;;  %3569 = vmatprep.mubr.msk.f32.mxu0 %vm665_vm1, %v657_v36  ;;  %v3256_v35 = vld [vmem:[%s4712_s21 + $0x1c0] sm:$0xff]  ;;  %v3257_v36 = vld [vmem:[%s4712_s21 + $0x1c8] sm:$0xff] }
  0x79   : > { %3600 = vmatprep.mubr.msk.f32.mxu1 %vm877_vm0, %v873_v38  ;;  %v3259_v38 = vld [vmem:[%s4712_s21 + $0x1d8] sm:$0xff] }
  0x7b   : > { %3570 = vmatmul.mubr.msk.f32.gmra.mrb[12].mxu0 %vm665_vm1, %v658_v40  ;;  %v641_v40 = vld [vmem:[%s6307_s7 + $0x60] sm:$0xff] }
  0x7c   : > { %3601 = vmatmul.mubr.msk.f32.gmra.mrb[14].mxu1 %vm877_vm0, %v874_v41  ;;  %3572 = vmatprep.mubr.msk.f32.mxu0 %vm665_vm1, %v659_v42  ;;  %v642_v41 = vld [vmem:[%s6307_s7 + $0x68] sm:$0xff]  ;;  %v3260_v42 = vld [vmem:[%s4712_s21 + $0x1e0] sm:$0xff] }
  0x7d   : > { %3607 = vmatprep.mubr.msk.f32.mxu1 %vm877_vm0, %v3184_v43  ;;  %v4976_v43 = vpack.c.bf16 %v642_v41, %v641_v40 }
  0x7f   : > { %3573 = vmatmul.mubr.msk.f32.gmra.mrb[14].mxu0 %vm665_vm1, %v660_v44  ;;  %v3261_v44 = vld [vmem:[%s4712_s21 + $0x1e8] sm:$0xff] }
  0x80   : > { %3608 = vmatmul.mubr.msk.f32.vlgmr.msra.gmra.mrb[16].mxu1 %vm877_vm0, %v3185_v45  ;;  %3635 = vmatprep.mubr.msk.f32.mxu0 %vm877_vm0, %v3216_v46  ;;  %v643_v45 = vld [vmem:[%s6307_s7 + $0x70] sm:$0xff]  ;;  %v644_v46 = vld [vmem:[%s6307_s7 + $0x78] sm:$0xff] }
  0x81   : > { %3990 = vmatpush3.bf16.msra.mxu1 %v4731_v7  ;;  %3610 = vmatprep.mubr.msk.f32.mxu1 %vm877_vm0, %v3186_v47  ;;  %v3223_v7 = vld [vmem:[%s4712_s21 + $0x138] sm:$0xff]  ;;  %v3262_v47 = vld [vmem:[%s4712_s21 + $0x1f0] sm:$0xff]  ;;  %v4991_v48 = vpack.c.bf16 %v644_v46, %v643_v45  ;;  %s3149_s21 = sshll.u32 %s4709_s19, 7 }
  0x82   : > { %4024 = vmatprep.subr.bf16.mxu1 %v4805_v39  ;;  %s6231_s12 = scalar_lea.vmem [#allocation6], %s3149_s21 }
  0x83   : > { %3636 = vmatmul.mubr.msk.f32.vlgmr.msra.gmra.mrb[16].mxu0 %vm877_vm0, %v3217_v50 }
  0x84   : > { %3611 = vmatmul.mubr.msk.f32.gmra.mrb[18].mxu1 %vm877_vm0, %v3187_v51  ;;  %3638 = vmatprep.mubr.msk.f32.mxu0 %vm877_vm0, %v3218_v52 }
  0x85   : > { %3613 = vmatprep.mubr.msk.f32.mxu1 %vm877_vm0, %v3188_v53  ;;  %3994 = vmatpush3.bf16.msra.mxu0 %v4805_v39 }
  0x86   : > { %3996 = vmatprep.subr.bf16.mxu0 %v4839_v54 }
  0x87   : > { %3639 = vmatmul.mubr.msk.f32.gmra.mrb[18].mxu0 %vm877_vm0, %v3219_v57 }
  0x88   : > { %3614 = vmatmul.mubr.msk.f32.gmra.mrb[20].mxu1 %vm877_vm0, %v3189_v58  ;;  %3641 = vmatprep.mubr.msk.f32.mxu0 %vm877_vm0, %v3220_v59 }
  0x89   : > { %3616 = vmatprep.mubr.msk.f32.mxu1 %vm877_vm0, %v3190_v60  ;;  %3998 = vmatpush3.bf16.msra.mxu0 %v4839_v54 }
  0x8a   : > { %4000 = vmatprep.subr.bf16.mxu0 %v4858_v61 }
  0x8b   : > { %3642 = vmatmul.mubr.msk.f32.gmra.mrb[20].mxu0 %vm877_vm0, %v3221_v0 }
  0x8c   : > { %3617 = vmatmul.mubr.msk.f32.gmra.mrb[22].mxu1 %vm877_vm0, %v3191_v1  ;;  %3644 = vmatprep.mubr.msk.f32.mxu0 %vm877_vm0, %v3222_v2 }
  0x8d   : > { %3619 = vmatprep.mubr.msk.f32.mxu1 %vm877_vm0, %v3192_v3  ;;  %4002 = vmatpush3.bf16.msra.mxu0 %v4858_v61 }
  0x8e   : > { %4004 = vmatprep.subr.bf16.mxu0 %v4876_v4 }
  0x8f   : > { %3645 = vmatmul.mubr.msk.f32.gmra.mrb[22].mxu0 %vm877_vm0, %v3223_v7 }
  0x90   : > { %3620 = vmatmul.mubr.msk.f32.gmra.mrb[24].mxu1 %vm877_vm0, %v3193_v8  ;;  %3647 = vmatprep.mubr.msk.f32.mxu0 %vm877_vm0, %v3224_v9 }
  0x91   : > { %3622 = vmatprep.mubr.msk.f32.mxu1 %vm877_vm0, %v3194_v10  ;;  %4006 = vmatpush3.bf16.msra.mxu0 %v4876_v4 }
  0x92   : > { %4008 = vmatprep.subr.bf16.mxu0 %v4894_v11 }
  0x93   : > { %3648 = vmatmul.mubr.msk.f32.gmra.mrb[24].mxu0 %vm877_vm0, %v3225_v14 }
  0x94   : > { %3623 = vmatmul.mubr.msk.f32.gmra.mrb[26].mxu1 %vm877_vm0, %v3195_v15  ;;  %3650 = vmatprep.mubr.msk.f32.mxu0 %vm877_vm0, %v3226_v16 }
  0x95   : > { %3625 = vmatprep.mubr.msk.f32.mxu1 %vm877_vm0, %v3196_v17  ;;  %4010 = vmatpush3.bf16.msra.mxu0 %v4894_v11 }
  0x96   : > { %4012 = vmatprep.subr.bf16.mxu0 %v4912_v18 }
  0x97   : > { %3651 = vmatmul.mubr.msk.f32.gmra.mrb[26].mxu0 %vm877_vm0, %v3227_v19 }
  0x98   : > { %3626 = vmatmul.mubr.msk.f32.gmra.mrb[28].mxu1 %vm877_vm0, %v3197_v20  ;;  %3653 = vmatprep.mubr.msk.f32.mxu0 %vm877_vm0, %v3228_v21 }
  0x99   : > { %3628 = vmatprep.mubr.msk.f32.mxu1 %vm877_vm0, %v3198_v22  ;;  %4014 = vmatpush3.bf16.msra.mxu0 %v4912_v18 }
  0x9a   : > { %4016 = vmatprep.subr.bf16.mxu0 %v4976_v43 }
  0x9b   : > { %3654 = vmatmul.mubr.msk.f32.gmra.mrb[28].mxu0 %vm877_vm0, %v3229_v23 }
  0x9c   : > { %3629 = vmatmul.mubr.msk.f32.gmra.mrb[30].mxu1 %vm877_vm0, %v3199_v24  ;;  %3656 = vmatprep.mubr.msk.f32.mxu0 %vm877_vm0, %v3230_v25 }
  0x9d   : > { %3663 = vmatprep.mubr.msk.f32.mxu1 %vm877_vm0, %v3248_v26  ;;  %4018 = vmatpush3.bf16.msra.mxu0 %v4976_v43 }
  0x9e   : > { %4020 = vmatprep.subr.bf16.mxu0 %v4991_v48 }
  0x9f   : > { %3657 = vmatmul.mubr.msk.f32.gmra.mrb[30].mxu0 %vm877_vm0, %v3231_v27 }
  0xa0   : > { %3664 = vmatmul.mubr.msk.f32.vlgmr.msra.gmra.mrb[32].mxu1 %vm877_vm0, %v3249_v28 }
  0xa1   : > { %3666 = vmatprep.mubr.msk.f32.mxu1 %vm877_vm0, %v3250_v29  ;;  %4026 = vmatpush3.bf16.msra.mxu1 %v4805_v39 }
  0xa2   : > { %4028 = vmatprep.subr.bf16.mxu1 %v4839_v54  ;;  %4022 = vmatpush3.bf16.msra.mxu0 %v4991_v48 }
  0xa3   : > { %4056 = vmatprep.subr.bf16.mxu0 %v4805_v39 }
  0xa4   : > { %3667 = vmatmul.mubr.msk.f32.gmra.mrb[34].mxu1 %vm877_vm0, %v3251_v30 }
  0xa5   : > { %3669 = vmatprep.mubr.msk.f32.mxu1 %vm877_vm0, %v3252_v31  ;;  %4030 = vmatpush3.bf16.msra.mxu1 %v4839_v54 }
  0xa6   : > { %4032 = vmatprep.subr.bf16.mxu1 %v4858_v61 }
  0xa8   : > { %3670 = vmatmul.mubr.msk.f32.gmra.mrb[36].mxu1 %vm877_vm0, %v3253_v32 }
  0xa9   : > { %3672 = vmatprep.mubr.msk.f32.mxu1 %vm877_vm0, %v3254_v33  ;;  %4034 = vmatpush3.bf16.msra.mxu1 %v4858_v61 }
  0xaa   : > { %4036 = vmatprep.subr.bf16.mxu1 %v4876_v4 }
  0xac   : > { %3673 = vmatmul.mubr.msk.f32.gmra.mrb[38].mxu1 %vm877_vm0, %v3255_v34 }
  0xad   : > { %3675 = vmatprep.mubr.msk.f32.mxu1 %vm877_vm0, %v3256_v35  ;;  %4038 = vmatpush3.bf16.msra.mxu1 %v4876_v4 }
  0xae   : > { %4040 = vmatprep.subr.bf16.mxu1 %v4894_v11 }
  0xb0   : > { %3676 = vmatmul.mubr.msk.f32.gmra.mrb[40].mxu1 %vm877_vm0, %v3257_v36 }
  0xb1   : > { %3678 = vmatprep.mubr.msk.f32.mxu1 %vm877_vm0, %v3258_v37  ;;  %4042 = vmatpush3.bf16.msra.mxu1 %v4894_v11 }
  0xb2   : > { %4044 = vmatprep.subr.bf16.mxu1 %v4912_v18 }
  0xb4   : > { %3679 = vmatmul.mubr.msk.f32.gmra.mrb[42].mxu1 %vm877_vm0, %v3259_v38 }
  0xb5   : > { %3681 = vmatprep.mubr.msk.f32.mxu1 %vm877_vm0, %v3260_v42  ;;  %4046 = vmatpush3.bf16.msra.mxu1 %v4912_v18 }
  0xb6   : > { %4048 = vmatprep.subr.bf16.mxu1 %v4976_v43 }
  0xb8   : > { %3682 = vmatmul.mubr.msk.f32.gmra.mrb[44].mxu1 %vm877_vm0, %v3261_v44 }
  0xb9   : > { %3684 = vmatprep.mubr.msk.f32.mxu1 %vm877_vm0, %v3262_v47  ;;  %4050 = vmatpush3.bf16.msra.mxu1 %v4976_v43 }
  0xba   : > { %4052 = vmatprep.subr.bf16.mxu1 %v4991_v48 }
  0xbc   : > { %3685 = vmatmul.mubr.msk.f32.gmra.mrb[46].mxu1 %vm877_vm0, %v3263_v49 }
  0xbd   : > { %4054 = vmatpush3.bf16.msra.mxu1 %v4991_v48 }
  0xbe   : > { %4088 = vmatprep.subr.bf16.mxu1 %v4805_v39 }
 0x133   : > { %v5006_v50 = vpop.f32.mrb[0].mxu1 }
 0x134   : > { %6405 = vst [vmem:[#allocation9_spill] sm:$0xff] %v5006_v50  ;;  %v5008_v51 = vpop.f32.mrb[1].mxu1 }
 0x135   : > { %6406 = vst [vmem:[#allocation10_spill] sm:$0xff] %v5008_v51 }
 0x136   : > { %v5010_v52 = vpop.f32.mrb[0].mxu0 }
 0x137   : > { %v1702_v53 = vmul.f32 %v5006_v50, %v5010_v52  ;;  %v5014_v55 = vpop.f32.mrb[2].mxu1  ;;  %v5016_v56 = vpop.f32.mrb[1].mxu0 }
 0x138   : > { %6407 = vst [vmem:[#allocation11_spill] sm:$0xff] %v5014_v55  ;;  %v5018_v57 = vpop.f32.mrb[3].mxu1  ;;  %v1701_v58 = vmul.f32 %v5008_v51, %v5016_v56 }
 0x139   : > { %6408 = vst [vmem:[#allocation12_spill] sm:$0xff] %v5018_v57 }
 0x13a   : > { %v5022_v59 = vpop.f32.mrb[2].mxu0  ;;  %3719 = vmatprep.mubr.f32.mxu0 %v1701_v58 }
 0x13b   : > { %v5024_v60 = vpop.f32.mrb[4].mxu1  ;;  %v5026_v62 = vpop.f32.mrb[3].mxu0  ;;  %3720 = vmatmul.mubr.f32.vlgmr.msra.gmra.mrb[32].mxu0 %v1702_v53  ;;  %v1704_v63 = vmul.f32 %v5014_v55, %v5022_v59 }
 0x13c   : > { %6409 = vst [vmem:[#allocation13_spill] sm:$0xff] %v5024_v60  ;;  %v5030_v0 = vpop.f32.mrb[5].mxu1  ;;  %4058 = vmatpush3.bf16.msra.mxu0 %v4805_v39  ;;  %v1703_v1 = vmul.f32 %v5018_v57, %v5026_v62 }
 0x13d   : > { %6410 = vst [vmem:[#allocation14_spill] sm:$0xff] %v5030_v0  ;;  %4060 = vmatprep.subr.bf16.mxu0 %v4839_v54 }
 0x13e   : > { %v5036_v2 = vpop.f32.mrb[4].mxu0  ;;  %3722 = vmatprep.mubr.f32.mxu0 %v1703_v1 }
 0x13f   : > { %v5038_v3 = vpop.f32.mrb[6].mxu1  ;;  %v5040_v5 = vpop.f32.mrb[5].mxu0  ;;  %3723 = vmatmul.mubr.f32.gmra.mrb[34].mxu0 %v1704_v63  ;;  %v1706_v6 = vmul.f32 %v5024_v60, %v5036_v2 }
 0x140   : > { %6411 = vst [vmem:[#allocation15_spill] sm:$0xff] %v5038_v3  ;;  %v5044_v7 = vpop.f32.mrb[7].mxu1  ;;  %4062 = vmatpush3.bf16.msra.mxu0 %v4839_v54  ;;  %v1705_v8 = vmul.f32 %v5030_v0, %v5040_v5 }
 0x141   : > { %6412 = vst [vmem:[#allocation16_spill] sm:$0xff] %v5044_v7  ;;  %4064 = vmatprep.subr.bf16.mxu0 %v4858_v61 }
 0x142   : > { %v5050_v9 = vpop.f32.mrb[6].mxu0  ;;  %3725 = vmatprep.mubr.f32.mxu0 %v1705_v8 }
 0x143   : > { %v5052_v10 = vpop.f32.mrb[8].mxu1  ;;  %v5054_v12 = vpop.f32.mrb[7].mxu0  ;;  %3726 = vmatmul.mubr.f32.gmra.mrb[36].mxu0 %v1706_v6  ;;  %v1708_v13 = vmul.f32 %v5038_v3, %v5050_v9 }
 0x144   : > { %6413 = vst [vmem:[#allocation17_spill] sm:$0xff] %v5052_v10  ;;  %v5058_v14 = vpop.f32.mrb[9].mxu1  ;;  %4066 = vmatpush3.bf16.msra.mxu0 %v4858_v61  ;;  %v1707_v15 = vmul.f32 %v5044_v7, %v5054_v12 }
 0x145   : > { %6414 = vst [vmem:[#allocation18_spill] sm:$0xff] %v5058_v14  ;;  %4068 = vmatprep.subr.bf16.mxu0 %v4876_v4 }
 0x146   : > { %v5064_v16 = vpop.f32.mrb[8].mxu0  ;;  %3728 = vmatprep.mubr.f32.mxu0 %v1707_v15 }
 0x147   : > { %v5066_v17 = vpop.f32.mrb[10].mxu1  ;;  %v5068_v19 = vpop.f32.mrb[9].mxu0  ;;  %3729 = vmatmul.mubr.f32.gmra.mrb[38].mxu0 %v1708_v13  ;;  %v1710_v20 = vmul.f32 %v5052_v10, %v5064_v16 }
 0x148   : > { %6415 = vst [vmem:[#allocation19_spill] sm:$0xff] %v5066_v17  ;;  %v5072_v21 = vpop.f32.mrb[11].mxu1  ;;  %4070 = vmatpush3.bf16.msra.mxu0 %v4876_v4  ;;  %v1709_v22 = vmul.f32 %v5058_v14, %v5068_v19 }
 0x149   : > { %6416 = vst [vmem:[#allocation20_spill] sm:$0xff] %v5072_v21  ;;  %4072 = vmatprep.subr.bf16.mxu0 %v4894_v11 }
 0x14a   : > { %v5078_v23 = vpop.f32.mrb[10].mxu0  ;;  %3731 = vmatprep.mubr.f32.mxu0 %v1709_v22 }
 0x14b   : > { %v5080_v24 = vpop.f32.mrb[12].mxu1  ;;  %v5082_v25 = vpop.f32.mrb[11].mxu0  ;;  %3732 = vmatmul.mubr.f32.gmra.mrb[40].mxu0 %v1710_v20  ;;  %v1712_v26 = vmul.f32 %v5066_v17, %v5078_v23 }
 0x14c   : > { %6417 = vst [vmem:[#allocation21_spill] sm:$0xff] %v5080_v24  ;;  %v5086_v27 = vpop.f32.mrb[13].mxu1  ;;  %4074 = vmatpush3.bf16.msra.mxu0 %v4894_v11  ;;  %v1711_v28 = vmul.f32 %v5072_v21, %v5082_v25  ;;  %v5406_v21 = vstv %s3281_s20 }
 0x14d   : > { %6418 = vst [vmem:[#allocation22_spill] sm:$0xff] %v5086_v27  ;;  %4076 = vmatprep.subr.bf16.mxu0 %v4912_v18 }
 0x14e   : > { %v5092_v29 = vpop.f32.mrb[12].mxu0  ;;  %3734 = vmatprep.mubr.f32.mxu0 %v1711_v28 }
 0x14f   : > { %v5094_v30 = vpop.f32.mrb[14].mxu1  ;;  %v5096_v31 = vpop.f32.mrb[13].mxu0  ;;  %3735 = vmatmul.mubr.f32.gmra.mrb[42].mxu0 %v1712_v26  ;;  %v1714_v32 = vmul.f32 %v5080_v24, %v5092_v29 }
 0x150   : > { %6419 = vst [vmem:[#allocation23_spill] sm:$0xff] %v5094_v30  ;;  %v5100_v33 = vpop.f32.mrb[15].mxu1  ;;  %4078 = vmatpush3.bf16.msra.mxu0 %v4912_v18  ;;  %v1713_v34 = vmul.f32 %v5086_v27, %v5096_v31 }
 0x151   : > { %6420 = vst [vmem:[#allocation24_spill] sm:$0xff] %v5100_v33  ;;  %4080 = vmatprep.subr.bf16.mxu0 %v4976_v43 }
 0x152   : > { %v5106_v35 = vpop.f32.mrb[14].mxu0  ;;  %3737 = vmatprep.mubr.f32.mxu0 %v1713_v34 }
 0x153   : > { %v5108_v36 = vpop.f32.mrb[16].mxu1  ;;  %v5110_v37 = vpop.f32.mrb[15].mxu0  ;;  %3738 = vmatmul.mubr.f32.gmra.mrb[44].mxu0 %v1714_v32  ;;  %v1716_v38 = vmul.f32 %v5094_v30, %v5106_v35 }
 0x154   : > { %6421 = vst [vmem:[#allocation25_spill] sm:$0xff] %v5108_v36  ;;  %v1865_v40 = vmul.f32 %v5108_v36, %v5010_v52  ;;  %v5116_v41 = vpop.f32.mrb[17].mxu1  ;;  %4082 = vmatpush3.bf16.msra.mxu0 %v4976_v43  ;;  %v1715_v42 = vmul.f32 %v5100_v33, %v5110_v37 }
 0x155   : > { %6422 = vst [vmem:[#allocation26_spill] sm:$0xff] %v5116_v41  ;;  %v1864_v44 = vmul.f32 %v5116_v41, %v5016_v56  ;;  %4084 = vmatprep.subr.bf16.mxu0 %v4991_v48 }
 0x156   : > { %v5124_v45 = vpop.f32.mrb[16].mxu0  ;;  %3740 = vmatprep.mubr.f32.mxu0 %v1715_v42 }
 0x157   : > { %6423 = vst [vmem:[#allocation27_spill] sm:$0xff] %v5124_v45  ;;  %v5126_v46 = vpop.f32.mrb[18].mxu1  ;;  %v2028_v47 = vmul.f32 %v5124_v45, %v5010_v52  ;;  %3775 = vmatprep.mubr.f32.mxu1 %v1864_v44  ;;  %v5130_v49 = vpop.f32.mrb[17].mxu0  ;;  %3741 = vmatmul.mubr.f32.gmra.mrb[46].mxu0 %v1716_v38 }
 0x158   : > { %6424 = vst [vmem:[#allocation28_spill] sm:$0xff] %v5126_v46  ;;  %6425 = vst [vmem:[#allocation29_spill] sm:$0xff] %v5130_v49  ;;  %v1867_v53 = vmul.f32 %v5126_v46, %v5022_v59  ;;  %v5134_v58 = vpop.f32.mrb[19].mxu1  ;;  %v2027_v63 = vmul.f32 %v5130_v49, %v5016_v56  ;;  %3776 = vmatmul.mubr.f32.vlgmr.msra.gmra.mrb[48].mxu1 %v1865_v40  ;;  %4086 = vmatpush3.bf16.msra.mxu0 %v4991_v48 }
 0x159   : > { %6426 = vst [vmem:[#allocation30_spill] sm:$0xff] %v5134_v58  ;;  %v1866_v1 = vmul.f32 %v5134_v58, %v5026_v62  ;;  %4090 = vmatpush3.bf16.msra.mxu1 %v4805_v39 }
 0x15a   : > { %v5142_v6 = vpop.f32.mrb[18].mxu0  ;;  %3831 = vmatprep.mubr.f32.mxu0 %v2027_v63  ;;  %4092 = vmatprep.subr.bf16.mxu1 %v4839_v54 }
 0x15b   : > { %6427 = vst [vmem:[#allocation31_spill] sm:$0xff] %v5142_v6  ;;  %v5145_v8 = vpop.f32.mrb[20].mxu1  ;;  %v2030_v13 = vmul.f32 %v5142_v6, %v5022_v59  ;;  %3778 = vmatprep.mubr.f32.mxu1 %v1866_v1  ;;  %v5149_v15 = vpop.f32.mrb[19].mxu0  ;;  %3832 = vmatmul.mubr.f32.vlgmr.msra.gmra.mrb[48].mxu0 %v2028_v47 }
 0x15c   : > { %6428 = vst [vmem:[#allocation32_spill] sm:$0xff] %v5145_v8  ;;  %6429 = vst [vmem:[#allocation33_spill] sm:$0xff] %v5149_v15  ;;  %v1869_v20 = vmul.f32 %v5145_v8, %v5036_v2  ;;  %v5153_v22 = vpop.f32.mrb[21].mxu1  ;;  %v2029_v39 = vmul.f32 %v5149_v15, %v5026_v62  ;;  %3779 = vmatmul.mubr.f32.gmra.mrb[50].mxu1 %v1867_v53 }
 0x15d   : > { %6430 = vst [vmem:[#allocation34_spill] sm:$0xff] %v5153_v22  ;;  %v1868_v26 = vmul.f32 %v5153_v22, %v5040_v5  ;;  %4094 = vmatpush3.bf16.msra.mxu1 %v4839_v54 }
 0x15e   : > { %v5160_v28 = vpop.f32.mrb[20].mxu0  ;;  %3834 = vmatprep.mubr.f32.mxu0 %v2029_v39  ;;  %4096 = vmatprep.subr.bf16.mxu1 %v4858_v61 }
 0x15f   : > { %6431 = vst [vmem:[#allocation35_spill] sm:$0xff] %v5160_v28  ;;  %v5163_v32 = vpop.f32.mrb[22].mxu1  ;;  %v2032_v34 = vmul.f32 %v5160_v28, %v5036_v2  ;;  %3781 = vmatprep.mubr.f32.mxu1 %v1868_v26  ;;  %v5167_v38 = vpop.f32.mrb[21].mxu0  ;;  %3835 = vmatmul.mubr.f32.gmra.mrb[50].mxu0 %v2030_v13 }
 0x160   : > { %6432 = vst [vmem:[#allocation36_spill] sm:$0xff] %v5163_v32  ;;  %6433 = vst [vmem:[#allocation37_spill] sm:$0xff] %v5167_v38  ;;  %v1871_v40 = vmul.f32 %v5163_v32, %v5050_v9  ;;  %v5171_v42 = vpop.f32.mrb[23].mxu1  ;;  %v2031_v54 = vmul.f32 %v5167_v38, %v5040_v5  ;;  %3782 = vmatmul.mubr.f32.gmra.mrb[52].mxu1 %v1869_v20 }
 0x161   : > { %6434 = vst [vmem:[#allocation38_spill] sm:$0xff] %v5171_v42  ;;  %v1870_v44 = vmul.f32 %v5171_v42, %v5054_v12  ;;  %4098 = vmatpush3.bf16.msra.mxu1 %v4858_v61 }
 0x162   : > { %v5178_v47 = vpop.f32.mrb[22].mxu0  ;;  %3837 = vmatprep.mubr.f32.mxu0 %v2031_v54  ;;  %4100 = vmatprep.subr.bf16.mxu1 %v4876_v4 }
 0x163   : > { %6435 = vst [vmem:[#allocation39_spill] sm:$0xff] %v5178_v47  ;;  %v5181_v53 = vpop.f32.mrb[24].mxu1  ;;  %v2034_v63 = vmul.f32 %v5178_v47, %v5050_v9  ;;  %3784 = vmatprep.mubr.f32.mxu1 %v1870_v44  ;;  %v5185_v1 = vpop.f32.mrb[23].mxu0  ;;  %3838 = vmatmul.mubr.f32.gmra.mrb[52].mxu0 %v2032_v34 }
 0x164   : > { %6436 = vst [vmem:[#allocation40_spill] sm:$0xff] %v5181_v53  ;;  %6437 = vst [vmem:[#allocation41_spill] sm:$0xff] %v5185_v1  ;;  %v1873_v13 = vmul.f32 %v5181_v53, %v5064_v16  ;;  %v5189_v20 = vpop.f32.mrb[25].mxu1  ;;  %v2033_v61 = vmul.f32 %v5185_v1, %v5054_v12  ;;  %3785 = vmatmul.mubr.f32.gmra.mrb[54].mxu1 %v1871_v40 }
 0x165   : > { %6438 = vst [vmem:[#allocation42_spill] sm:$0xff] %v5189_v20  ;;  %v1872_v39 = vmul.f32 %v5189_v20, %v5068_v19  ;;  %4102 = vmatpush3.bf16.msra.mxu1 %v4876_v4 }
 0x166   : > { %v5196_v26 = vpop.f32.mrb[24].mxu0  ;;  %3840 = vmatprep.mubr.f32.mxu0 %v2033_v61  ;;  %4104 = vmatprep.subr.bf16.mxu1 %v4894_v11 }
 0x167   : > { %6439 = vst [vmem:[#allocation43_spill] sm:$0xff] %v5196_v26  ;;  %v5199_v34 = vpop.f32.mrb[26].mxu1  ;;  %v2036_v54 = vmul.f32 %v5196_v26, %v5064_v16  ;;  %3787 = vmatprep.mubr.f32.mxu1 %v1872_v39  ;;  %v5203_v44 = vpop.f32.mrb[25].mxu0  ;;  %3841 = vmatmul.mubr.f32.gmra.mrb[54].mxu0 %v2034_v63 }
 0x168   : > { %6440 = vst [vmem:[#allocation44_spill] sm:$0xff] %v5199_v34  ;;  %6441 = vst [vmem:[#allocation45_spill] sm:$0xff] %v5203_v44  ;;  %v1875_v40 = vmul.f32 %v5199_v34, %v5078_v23  ;;  %v5207_v30 = vpop.f32.mrb[27].mxu1  ;;  %v2035_v4 = vmul.f32 %v5203_v44, %v5068_v19  ;;  %3788 = vmatmul.mubr.f32.gmra.mrb[56].mxu1 %v1873_v13 }
 0x169   : > { %6442 = vst [vmem:[#allocation46_spill] sm:$0xff] %v5207_v30  ;;  %v1874_v61 = vmul.f32 %v5207_v30, %v5082_v25  ;;  %4106 = vmatpush3.bf16.msra.mxu1 %v4894_v11 }
 0x16a   : > { %v5214_v33 = vpop.f32.mrb[26].mxu0  ;;  %3843 = vmatprep.mubr.f32.mxu0 %v2035_v4  ;;  %4108 = vmatprep.subr.bf16.mxu1 %v4912_v18 }
 0x16b   : > { %6443 = vst [vmem:[#allocation47_spill] sm:$0xff] %v5214_v33  ;;  %v5217_v63 = vpop.f32.mrb[28].mxu1  ;;  %v2038_v39 = vmul.f32 %v5214_v33, %v5078_v23  ;;  %3790 = vmatprep.mubr.f32.mxu1 %v1874_v61  ;;  %v5221_v24 = vpop.f32.mrb[27].mxu0  ;;  %3844 = vmatmul.mubr.f32.gmra.mrb[56].mxu0 %v2036_v54 }
 0x16c   : > { %6444 = vst [vmem:[#allocation48_spill] sm:$0xff] %v5217_v63  ;;  %6445 = vst [vmem:[#allocation49_spill] sm:$0xff] %v5221_v24  ;;  %v1877_v13 = vmul.f32 %v5217_v63, %v5092_v29  ;;  %v5225_v27 = vpop.f32.mrb[29].mxu1  ;;  %v2037_v11 = vmul.f32 %v5221_v24, %v5082_v25  ;;  %3791 = vmatmul.mubr.f32.gmra.mrb[58].mxu1 %v1875_v40 }
 0x16d   : > { %6446 = vst [vmem:[#allocation50_spill] sm:$0xff] %v5225_v27  ;;  %v1876_v4 = vmul.f32 %v5225_v27, %v5096_v31  ;;  %4110 = vmatpush3.bf16.msra.mxu1 %v4912_v18 }
 0x16e   : > { %v5232_v34 = vpop.f32.mrb[28].mxu0  ;;  %3846 = vmatprep.mubr.f32.mxu0 %v2037_v11  ;;  %4112 = vmatprep.subr.bf16.mxu1 %v4976_v43 }
 0x16f   : > { %6447 = vst [vmem:[#allocation51_spill] sm:$0xff] %v5232_v34  ;;  %v5235_v54 = vpop.f32.mrb[30].mxu1  ;;  %v2040_v61 = vmul.f32 %v5232_v34, %v5092_v29  ;;  %3793 = vmatprep.mubr.f32.mxu1 %v1876_v4  ;;  %v5239_v63 = vpop.f32.mrb[29].mxu0  ;;  %3847 = vmatmul.mubr.f32.gmra.mrb[58].mxu0 %v2038_v39 }
 0x170   : > { %6448 = vst [vmem:[#allocation52_spill] sm:$0xff] %v5235_v54  ;;  %6449 = vst [vmem:[#allocation53_spill] sm:$0xff] %v5239_v63  ;;  %v1879_v40 = vmul.f32 %v5235_v54, %v5106_v35  ;;  %v5243_v27 = vpop.f32.mrb[31].mxu1  ;;  %v2039_v18 = vmul.f32 %v5239_v63, %v5096_v31  ;;  %3794 = vmatmul.mubr.f32.gmra.mrb[60].mxu1 %v1877_v13 }
 0x171   : > { %6450 = vst [vmem:[#allocation54_spill] sm:$0xff] %v5243_v27  ;;  %v1878_v11 = vmul.f32 %v5243_v27, %v5110_v37  ;;  %4114 = vmatpush3.bf16.msra.mxu1 %v4976_v43 }
 0x172   : > { %v5250_v33 = vpop.f32.mrb[30].mxu0  ;;  %3849 = vmatprep.mubr.f32.mxu0 %v2039_v18  ;;  %4116 = vmatprep.subr.bf16.mxu1 %v4991_v48 }
 0x173   : > { %6451 = vst [vmem:[#allocation55_spill] sm:$0xff] %v5250_v33  ;;  %v2042_v39 = vmul.f32 %v5250_v33, %v5106_v35  ;;  %v5255_v4 = vpop.f32.mrb[32].mxu1  ;;  %3796 = vmatprep.mubr.f32.mxu1 %v1878_v11  ;;  %v5257_v54 = vpop.f32.mrb[31].mxu0  ;;  %3850 = vmatmul.mubr.f32.gmra.mrb[60].mxu0 %v2040_v61 }
 0x174   : > { %6452 = vst [vmem:[#allocation56_spill] sm:$0xff] %v5255_v4  ;;  %6453 = vst [vmem:[#allocation57_spill] sm:$0xff] %v5257_v54  ;;  %v2191_v13 = vmul.f32 %v5255_v4, %v5010_v52  ;;  %v2041_v43 = vmul.f32 %v5257_v54, %v5110_v37  ;;  %v5263_v27 = vpop.f32.mrb[33].mxu1  ;;  %3797 = vmatmul.mubr.f32.gmra.mrb[62].mxu1 %v1879_v40 }
 0x175   : > { %6454 = vst [vmem:[#allocation58_spill] sm:$0xff] %v5263_v27  ;;  %v2190_v18 = vmul.f32 %v5263_v27, %v5016_v56  ;;  %4118 = vmatpush3.bf16.msra.mxu1 %v4991_v48 }
 0x176   : > { %3852 = vmatprep.mubr.f32.mxu0 %v2041_v43 }
 0x177   : > { %v5268_v33 = vpop.f32.mrb[34].mxu1  ;;  %3887 = vmatprep.mubr.f32.mxu1 %v2190_v18  ;;  %3853 = vmatmul.mubr.f32.gmra.mrb[62].mxu0 %v2042_v39 }
 0x178   : > { %6455 = vst [vmem:[#allocation59_spill] sm:$0xff] %v5268_v33  ;;  %v2193_v61 = vmul.f32 %v5268_v33, %v5022_v59  ;;  %v5272_v52 = vpop.f32.mrb[35].mxu1  ;;  %3888 = vmatmul.mubr.f32.vlgmr.msra.gmra.mrb[64].mxu1 %v2191_v13 }
 0x179   : > { %6456 = vst [vmem:[#allocation60_spill] sm:$0xff] %v5272_v52  ;;  %v2192_v11 = vmul.f32 %v5272_v52, %v5026_v62 }
 0x17b   : > { %v5276_v40 = vpop.f32.mrb[36].mxu1  ;;  %3890 = vmatprep.mubr.f32.mxu1 %v2192_v11 }
 0x17c   : > { %6457 = vst [vmem:[#allocation61_spill] sm:$0xff] %v5276_v40  ;;  %v2195_v48 = vmul.f32 %v5276_v40, %v5036_v2  ;;  %v5280_v56 = vpop.f32.mrb[37].mxu1  ;;  %3891 = vmatmul.mubr.f32.gmra.mrb[66].mxu1 %v2193_v61 }
 0x17d   : > { %6458 = vst [vmem:[#allocation62_spill] sm:$0xff] %v5280_v56  ;;  %v2194_v39 = vmul.f32 %v5280_v56, %v5040_v5 }
 0x17f   : > { %v5284_v43 = vpop.f32.mrb[38].mxu1  ;;  %3893 = vmatprep.mubr.f32.mxu1 %v2194_v39 }
 0x180   : > { %6459 = vst [vmem:[#allocation63_spill] sm:$0xff] %v5284_v43  ;;  %v2197_v59 = vmul.f32 %v5284_v43, %v5050_v9  ;;  %v5288_v13 = vpop.f32.mrb[39].mxu1  ;;  %3894 = vmatmul.mubr.f32.gmra.mrb[68].mxu1 %v2195_v48 }
 0x181   : > { %6460 = vst [vmem:[#allocation64_spill] sm:$0xff] %v5288_v13  ;;  %v2196_v62 = vmul.f32 %v5288_v13, %v5054_v12 }
 0x183   : > { %v5292_v18 = vpop.f32.mrb[40].mxu1  ;;  %3896 = vmatprep.mubr.f32.mxu1 %v2196_v62 }
 0x184   : > { %6461 = vst [vmem:[#allocation65_spill] sm:$0xff] %v5292_v18  ;;  %v2199_v2 = vmul.f32 %v5292_v18, %v5064_v16  ;;  %v5296_v61 = vpop.f32.mrb[41].mxu1  ;;  %3897 = vmatmul.mubr.f32.gmra.mrb[70].mxu1 %v2197_v59 }
 0x185   : > { %6462 = vst [vmem:[#allocation66_spill] sm:$0xff] %v5296_v61  ;;  %v2198_v5 = vmul.f32 %v5296_v61, %v5068_v19 }
 0x187   : > { %v5300_v11 = vpop.f32.mrb[42].mxu1  ;;  %3899 = vmatprep.mubr.f32.mxu1 %v2198_v5 }
 0x188   : > { %6463 = vst [vmem:[#allocation67_spill] sm:$0xff] %v5300_v11  ;;  %v2201_v9 = vmul.f32 %v5300_v11, %v5078_v23  ;;  %v5304_v48 = vpop.f32.mrb[43].mxu1  ;;  %3900 = vmatmul.mubr.f32.gmra.mrb[72].mxu1 %v2199_v2 }
 0x189   : > { %6464 = vst [vmem:[#allocation68_spill] sm:$0xff] %v5304_v48  ;;  %v2200_v12 = vmul.f32 %v5304_v48, %v5082_v25 }
 0x18b   : > { %v5308_v39 = vpop.f32.mrb[44].mxu1  ;;  %3902 = vmatprep.mubr.f32.mxu1 %v2200_v12  ;;  %v2853_v12 = vld [vmem:[%s6305_s5 + $0x20] sm:$0xff] }
 0x18c   : > { %6465 = vst [vmem:[#allocation69_spill] sm:$0xff] %v5308_v39  ;;  %v2203_v16 = vmul.f32 %v5308_v39, %v5092_v29  ;;  %v5312_v59 = vpop.f32.mrb[45].mxu1  ;;  %3903 = vmatmul.mubr.f32.gmra.mrb[74].mxu1 %v2201_v9  ;;  %v2849_v29 = vld [vmem:[%s6305_s5] sm:$0xff] }
 0x18d   : > { %6466 = vst [vmem:[#allocation70_spill] sm:$0xff] %v5312_v59  ;;  %v2202_v19 = vmul.f32 %v5312_v59, %v5096_v31  ;;  %v2850_v31 = vld [vmem:[%s6305_s5 + $0x8] sm:$0xff] }
 0x18e   : > { %v4119_v5 = vpack.c.bf16 %v2850_v31, %v2849_v29 }
 0x18f   : > { %v5316_v62 = vpop.f32.mrb[46].mxu1  ;;  %3905 = vmatprep.mubr.f32.mxu1 %v2202_v19 }
 0x190   : > { %6467 = vst [vmem:[#allocation71_spill] sm:$0xff] %v5316_v62  ;;  %v2205_v23 = vmul.f32 %v5316_v62, %v5106_v35  ;;  %v5320_v2 = vpop.f32.mrb[47].mxu1  ;;  %3906 = vmatmul.mubr.f32.gmra.mrb[76].mxu1 %v2203_v16  ;;  %4120 = vmatprep.subr.bf16.mxu0 %v4119_v5  ;;  %v2851_v35 = vld [vmem:[%s6305_s5 + $0x10] sm:$0xff]  ;;  %v2854_v16 = vld [vmem:[%s6305_s5 + $0x28] sm:$0xff] }
 0x191   : > { %6468 = vst [vmem:[#allocation72_spill] sm:$0xff] %v5320_v2  ;;  %v2204_v25 = vmul.f32 %v5320_v2, %v5110_v37  ;;  %4122 = vmatpush3.bf16.msra.mxu0 %v4119_v5  ;;  %v2852_v37 = vld [vmem:[%s6305_s5 + $0x18] sm:$0xff]  ;;  %v4127_v19 = vpack.c.bf16 %v2854_v16, %v2853_v12  ;;  %v2855_v5 = vld [vmem:[%s6305_s5 + $0x30] sm:$0xff]  ;;  %v2857_v12 = vld [vmem:[%s6305_s5 + $0x40] sm:$0xff] }
 0x192   : > { %v4123_v9 = vpack.c.bf16 %v2852_v37, %v2851_v35  ;;  %v2856_v35 = vld [vmem:[%s6305_s5 + $0x38] sm:$0xff]  ;;  %v2858_v16 = vld [vmem:[%s6305_s5 + $0x48] sm:$0xff] }
 0x193   : > { %3908 = vmatprep.mubr.f32.mxu1 %v2204_v25  ;;  %v4131_v37 = vpack.c.bf16 %v2856_v35, %v2855_v5  ;;  %v2859_v5 = vld [vmem:[%s6305_s5 + $0x50] sm:$0xff]  ;;  %v2860_v35 = vld [vmem:[%s6305_s5 + $0x58] sm:$0xff] }
 0x194   : > { %3909 = vmatmul.mubr.f32.gmra.mrb[78].mxu1 %v2205_v23  ;;  %4124 = vmatprep.subr.bf16.mxu0 %v4123_v9 }
 0x195   : > { %4126 = vmatpush3.bf16.msra.mxu0 %v4123_v9 }
 0x196   : > { %4128 = vmatprep.subr.bf16.mxu0 %v4127_v19 }
 0x199   : > { %4130 = vmatpush3.bf16.msra.mxu0 %v4127_v19  ;;  %v4135_v19 = vpack.c.bf16 %v2858_v16, %v2857_v12  ;;  %v2861_v12 = vld [vmem:[%s6305_s5 + $0x60] sm:$0xff]  ;;  %v2862_v16 = vld [vmem:[%s6305_s5 + $0x68] sm:$0xff] }
 0x19a   : > { %4132 = vmatprep.subr.bf16.mxu0 %v4131_v37 }
 0x19d   : > { %4134 = vmatpush3.bf16.msra.mxu0 %v4131_v37  ;;  %v4139_v37 = vpack.c.bf16 %v2860_v35, %v2859_v5  ;;  %v2863_v35 = vld [vmem:[%s6305_s5 + $0x70] sm:$0xff] }
 0x19e   : > { %4136 = vmatprep.subr.bf16.mxu0 %v4135_v19 }
 0x1a1   : > { %4138 = vmatpush3.bf16.msra.mxu0 %v4135_v19  ;;  %v4143_v19 = vpack.c.bf16 %v2862_v16, %v2861_v12  ;;  %v5392_v12 = vstv %s1717_s13  ;;  %v5394_v16 = vstv %s3280_s15  ;;  %s3290_s13 = sshll.u32 %s4516_s9, 11  ;;  %s3047_s15 = sshll.u32 %s6231_s12, 4  ;;  %s6254_s15 = int_to_ptr.vmem [resolvable:$true] %s3047_s15 }
 0x1a2   : > { %4140 = vmatprep.subr.bf16.mxu0 %v4139_v37  ;;  %s6252_s23 = scalar_lea.hbm %s6308_s8, %s3290_s13  ;;  %s4378_s24 = scalar_lea.vmem %s6254_s15, 2048 }
 0x1a3   : > { %p4379_p10 = scmp.ne.s32.totalorder %s6254_s15, %s4378_s24  ;;  %s4447_s9 = smov [#allocation6]  }
 0x1a5   : > { %4142 = vmatpush3.bf16.msra.mxu0 %v4139_v37  ;;  %v2864_v37 = vld [vmem:[%s6305_s5 + $0x78] sm:$0xff]  ;;  %p4380_p12 = pnand %p4379_p10, %p6593_p11 }
 0x1a6   : > { %4144 = vmatprep.subr.bf16.mxu0 %v4143_v19  ;;  %v4147_v63 = vpack.c.bf16 %v2864_v37, %v2863_v35 }
 0x1a7   : > { %p4381_p13 = pneg %p4380_p12 }
 0x1a9   : > { %4146 = vmatpush3.bf16.msra.mxu0 %v4143_v19 }
 0x1aa   : > { %4148 = vmatprep.subr.bf16.mxu0 %v4147_v63 }
 0x1ad   : > { %4150 = vmatpush3.bf16.msra.mxu0 %v4147_v63 }
 0x20e   : > { %v3721_v23 = vpop.f32.mrb[32].mxu0 }
 0x20f   : > { %v1785_v25 = vpop.f32.mrb[33].mxu0  ;;  %v5401_v30 = vadd.f32 %v3721_v23, %v5392_v12 }
 0x210   : > { %v5409_v63 = vadd.f32 %v1785_v25, %v5392_v12 }
 0x212   : > { %v3724_v29 = vpop.f32.mrb[34].mxu0 }
 0x213   : > { %v1795_v31 = vpop.f32.mrb[35].mxu0  ;;  %v5422_v44 = vadd.f32 %v3724_v29, %v5392_v12 }
 0x214   : > { %v5431_v14 = vadd.f32 %v1795_v31, %v5392_v12 }
 0x216   : > { %v5348_v9 = vpop.f32.mrb[36].mxu0 }
 0x217   : > { %v5350_v62 = vpop.f32.mrb[37].mxu0 }
 0x218   : > { %v5461_v1 = vadd.f32 %v5350_v62, %v5392_v12 }
 0x21a   : > { %v5358_v2 = vpop.f32.mrb[38].mxu0 }
 0x21b   : > { %v5360_v54 = vpop.f32.mrb[39].mxu0 }
 0x21c   : > { %v5491_v60 = vadd.f32 %v5360_v54, %v5392_v12 }
 0x21e   : > { %v5368_v39 = vpop.f32.mrb[40].mxu0 }
 0x21f   : > { %v5370_v34 = vpop.f32.mrb[41].mxu0 }
 0x220   : > { %v5521_v6 = vadd.f32 %v5370_v34, %v5392_v12 }
 0x222   : > { %v5378_v59 = vpop.f32.mrb[42].mxu0 }
 0x223   : > { %v5380_v5 = vpop.f32.mrb[43].mxu0 }
 0x224   : > { %v5551_v57 = vadd.f32 %v5380_v5, %v5392_v12 }
 0x226   : > { %v5388_v11 = vpop.f32.mrb[44].mxu0  ;;  %6469 = vst [vmem:[#allocation73_spill] sm:$0xff] %v5551_v57 }
 0x227   : > { %v5390_v17 = vpop.f32.mrb[45].mxu0 }
 0x228   : > { %v5581_v49 = vadd.f32 %v5390_v17, %v5392_v12 }
 0x22a   : > { %v5396_v19 = vpop.f32.mrb[46].mxu0  ;;  %6474 = vst [vmem:[#allocation78_spill] sm:$0xff] %v5581_v49 }
 0x22b   : > { %v3777_v48 = vpop.f32.mrb[48].mxu1  ;;  %v5398_v24 = vpop.f32.mrb[47].mxu0 }
 0x22c   : > { %v5404_v35 = vadd.f32 %v3777_v48, %v5394_v16  ;;  %v1948_v37 = vpop.f32.mrb[49].mxu1 }
 0x22d   : > { %v5412_v18 = vadd.f32 %v1948_v37, %v5394_v16 }
 0x22e   : > { %v2354_v26 = vmax.f32 %v5401_v30, %v5404_v35  ;;  %v3833_v53 = vpop.f32.mrb[48].mxu0 }
 0x22f   : > { %v2353_v23 = vmax.f32 %v5409_v63, %v5412_v18  ;;  %v3780_v10 = vpop.f32.mrb[50].mxu1  ;;  %v5419_v48 = vadd.f32 %v3833_v53, %v5406_v21  ;;  %v2111_v61 = vpop.f32.mrb[49].mxu0 }
 0x230   : > { %v5425_v25 = vadd.f32 %v3780_v10, %v5394_v16  ;;  %v1958_v37 = vpop.f32.mrb[51].mxu1  ;;  %v5428_v20 = vadd.f32 %v2111_v61, %v5406_v21 }
 0x231   : > { %v5434_v43 = vmax.f32 %v2354_v26, %v5419_v48  ;;  %v5437_v53 = vadd.f32 %v1958_v37, %v5394_v16  ;;  %v5451_v26 = vadd.f32 %v5348_v9, %v5392_v12 }
 0x232   : > { %v2356_v29 = vmax.f32 %v5422_v44, %v5425_v25  ;;  %v5442_v47 = vmax.f32 %v2353_v23, %v5428_v20  ;;  %v3836_v10 = vpop.f32.mrb[50].mxu0 }
 0x233   : > { %v2355_v61 = vmax.f32 %v5431_v14, %v5437_v53  ;;  %v3783_v32 = vpop.f32.mrb[52].mxu1  ;;  %v5447_v31 = vadd.f32 %v3836_v10, %v5406_v21  ;;  %v2121_v3 = vpop.f32.mrb[51].mxu0 }
 0x234   : > { %v5454_v37 = vadd.f32 %v3783_v32, %v5394_v16  ;;  %v1968_v13 = vpop.f32.mrb[53].mxu1  ;;  %v5457_v23 = vadd.f32 %v2121_v3, %v5406_v21 }
 0x235   : > { %v5464_v42 = vmax.f32 %v2356_v29, %v5447_v31  ;;  %v5467_v10 = vadd.f32 %v1968_v13, %v5394_v16  ;;  %v5481_v29 = vadd.f32 %v5358_v2, %v5392_v12 }
 0x236   : > { %v2358_v9 = vmax.f32 %v5451_v26, %v5454_v37  ;;  %v5472_v32 = vmax.f32 %v2355_v61, %v5457_v23  ;;  %v3839_v7 = vpop.f32.mrb[52].mxu0 }
 0x237   : > { %v2357_v3 = vmax.f32 %v5461_v1, %v5467_v10  ;;  %v3786_v40 = vpop.f32.mrb[54].mxu1  ;;  %v5477_v62 = vadd.f32 %v3839_v7, %v5406_v21  ;;  %v2131_v28 = vpop.f32.mrb[53].mxu0 }
 0x238   : > { %v5484_v13 = vadd.f32 %v3786_v40, %v5394_v16  ;;  %v1978_v8 = vpop.f32.mrb[55].mxu1  ;;  %v5487_v61 = vadd.f32 %v2131_v28, %v5406_v21 }
 0x239   : > { %v5494_v56 = vmax.f32 %v2358_v9, %v5477_v62  ;;  %v5497_v7 = vadd.f32 %v1978_v8, %v5394_v16  ;;  %v5511_v9 = vadd.f32 %v5368_v39, %v5392_v12 }
 0x23a   : > { %v2360_v2 = vmax.f32 %v5481_v29, %v5484_v13  ;;  %v5502_v40 = vmax.f32 %v2357_v3, %v5487_v61  ;;  %v3842_v38 = vpop.f32.mrb[54].mxu0 }
 0x23b   : > { %v2359_v28 = vmax.f32 %v5491_v60, %v5497_v7  ;;  %v3789_v22 = vpop.f32.mrb[56].mxu1  ;;  %v5507_v54 = vadd.f32 %v3842_v38, %v5406_v21  ;;  %v2141_v0 = vpop.f32.mrb[55].mxu0 }
 0x23c   : > { %v5514_v8 = vadd.f32 %v3789_v22, %v5394_v16  ;;  %v1988_v33 = vpop.f32.mrb[57].mxu1  ;;  %v5517_v3 = vadd.f32 %v2141_v0, %v5406_v21 }
 0x23d   : > { %v5524_v46 = vmax.f32 %v2360_v2, %v5507_v54  ;;  %v5527_v38 = vadd.f32 %v1988_v33, %v5394_v16  ;;  %v5541_v2 = vadd.f32 %v5378_v59, %v5392_v12 }
 0x23e   : > { %v2362_v39 = vmax.f32 %v5511_v9, %v5514_v8  ;;  %v5532_v22 = vmax.f32 %v2359_v28, %v5517_v3  ;;  %v3845_v55 = vpop.f32.mrb[56].mxu0 }
 0x23f   : > { %v2361_v0 = vmax.f32 %v5521_v6, %v5527_v38  ;;  %v3792_v52 = vpop.f32.mrb[58].mxu1  ;;  %v5537_v34 = vadd.f32 %v3845_v55, %v5406_v21  ;;  %v2151_v15 = vpop.f32.mrb[57].mxu0 }
 0x240   : > { %v5544_v33 = vadd.f32 %v3792_v52, %v5394_v16  ;;  %v1998_v58 = vpop.f32.mrb[59].mxu1  ;;  %v5547_v28 = vadd.f32 %v2151_v15, %v5406_v21 }
 0x241   : > { %v5554_v4 = vmax.f32 %v2362_v39, %v5537_v34  ;;  %v5557_v55 = vadd.f32 %v1998_v58, %v5394_v16  ;;  %v5571_v58 = vadd.f32 %v5388_v11, %v5392_v12 }
 0x242   : > { %v2364_v59 = vmax.f32 %v5541_v2, %v5544_v33  ;;  %v5562_v52 = vmax.f32 %v2361_v0, %v5547_v28  ;;  %v3848_v45 = vpop.f32.mrb[58].mxu0 }
 0x243   : > { %6470 = vst [vmem:[#allocation74_spill] sm:$0xff] %v5557_v55  ;;  %v2363_v15 = vmax.f32 %v5551_v57, %v5557_v55  ;;  %v3795_v36 = vpop.f32.mrb[60].mxu1  ;;  %v5567_v5 = vadd.f32 %v3848_v45, %v5406_v21  ;;  %v2161_v39 = vpop.f32.mrb[59].mxu0  ;;  %6471 = vst [vmem:[#allocation75_spill] sm:$0xff] %v5571_v58 }
 0x244   : > { %v5574_v50 = vadd.f32 %v3795_v36, %v5394_v16  ;;  %v2008_v27 = vpop.f32.mrb[61].mxu1  ;;  %v5577_v0 = vadd.f32 %v2161_v39, %v5406_v21 }
 0x245   : > { %v5584_v41 = vmax.f32 %v2364_v59, %v5567_v5  ;;  %v5587_v45 = vadd.f32 %v2008_v27, %v5394_v16  ;;  %v5601_v59 = vadd.f32 %v5396_v19, %v5392_v12 }
 0x246   : > { %6472 = vst [vmem:[#allocation76_spill] sm:$0xff] %v5574_v50  ;;  %6473 = vst [vmem:[#allocation77_spill] sm:$0xff] %v5577_v0  ;;  %v2366_v11 = vmax.f32 %v5571_v58, %v5574_v50  ;;  %v5592_v36 = vmax.f32 %v2363_v15, %v5577_v0  ;;  %v3851_v51 = vpop.f32.mrb[60].mxu0  ;;  %v5611_v58 = vadd.f32 %v5398_v24, %v5392_v12 }
 0x247   : > { %6475 = vst [vmem:[#allocation79_spill] sm:$0xff] %v5587_v45  ;;  %v2365_v39 = vmax.f32 %v5581_v49, %v5587_v45  ;;  %v3798_v55 = vpop.f32.mrb[62].mxu1  ;;  %v5597_v17 = vadd.f32 %v3851_v51, %v5406_v21  ;;  %v2171_v57 = vpop.f32.mrb[61].mxu0  ;;  %6477 = vst [vmem:[#allocation81_spill] sm:$0xff] %v5601_v59  ;;  %v5619_v49 = vstv %s3282_s25  ;;  %s4382_s25 = sshll.u32 %s4447_s9, 4  ;;  %s4383_s25 = int_to_ptr.vmem [resolvable:$false] %s4382_s25 }
 0x248   : > { %v5604_v27 = vadd.f32 %v3798_v55, %v5394_v16  ;;  %v2018_v50 = vpop.f32.mrb[63].mxu1  ;;  %v5607_v15 = vadd.f32 %v2171_v57, %v5406_v21  ;;  %6480 = vst [vmem:[#allocation84_spill] sm:$0xff] %v5611_v58  ;;  %s4384_s21 = scalar_lea.vmem %s4383_s25, 4096  ;;  %p4385_p0 = scmp.lt.s32.totalorder %s6254_s15, %s4383_s25 }
 0x249   : > { %6476 = vst [vmem:[#allocation80_spill] sm:$0xff] %v5597_v17  ;;  %v5614_v45 = vmax.f32 %v2366_v11, %v5597_v17  ;;  %v5617_v51 = vadd.f32 %v2018_v50, %v5394_v16  ;;  %p4386_p1 = scmp.lt.s32.totalorder %s4384_s21, %s4378_s24 }
 0x24a   : > { %6478 = vst [vmem:[#allocation82_spill] sm:$0xff] %v5604_v27  ;;  %6479 = vst [vmem:[#allocation83_spill] sm:$0xff] %v5607_v15  ;;  %v2368_v19 = vmax.f32 %v5601_v59, %v5604_v27  ;;  %v5624_v55 = vmax.f32 %v2365_v39, %v5607_v15  ;;  %v3854_v57 = vpop.f32.mrb[62].mxu0 }
 0x24b   : > { %6481 = vst [vmem:[#allocation85_spill] sm:$0xff] %v5617_v51  ;;  %v2367_v0 = vmax.f32 %v5611_v58, %v5617_v51  ;;  %v5629_v24 = vadd.f32 %v3854_v57, %v5406_v21  ;;  %v3889_v12 = vpop.f32.mrb[64].mxu1  ;;  %v2181_v11 = vpop.f32.mrb[63].mxu0  ;;  %p4387_p2 = por %p4386_p1, %p4385_p0 }
 0x24c   : > { %6482 = vst [vmem:[#allocation86_spill] sm:$0xff] %v5624_v55  ;;  %v2280_v50 = vadd.f32 %v3889_v12, %v5619_v49  ;;  %v5633_v16 = vadd.f32 %v2181_v11, %v5406_v21  ;;  %v2274_v17 = vpop.f32.mrb[65].mxu1 }
 0x24d   : > { %6483 = vst [vmem:[#allocation87_spill] sm:$0xff] %v5629_v24  ;;  %v5636_v27 = vmax.f32 %v2368_v19, %v5629_v24  ;;  %v2275_v39 = vadd.f32 %v2274_v17, %v5619_v49  ;;  %p4388_p3 = pnand %p4387_p2, %p4381_p13 }
 0x24e   : > { %6484 = vst [vmem:[#allocation88_spill] sm:$0xff] %v5633_v16  ;;  %v2386_v59 = vmax.f32 %v5434_v43, %v2280_v50  ;;  %v5641_v51 = vmax.f32 %v2367_v0, %v5633_v16 }
 0x24f   : > { %6485 = vst [vmem:[#allocation89_spill] sm:$0xff] %v5636_v27  ;;  %v2385_v57 = vmax.f32 %v5442_v47, %v2275_v39  ;;  %v3892_v58 = vpop.f32.mrb[66].mxu1 }
 0x250   : > { %6486 = vst [vmem:[#allocation90_spill] sm:$0xff] %v5641_v51  ;;  %v2402_v15 = vsub.f32 %v5401_v30, %v2386_v59  ;;  %v2450_v12 = vsub.f32 %v5404_v35, %v2386_v59  ;;  %v2498_v21 = vsub.f32 %v5419_v48, %v2386_v59  ;;  %v2546_v11 = vsub.f32 %v2280_v50, %v2386_v59  ;;  %v2284_v55 = vpop.f32.mrb[67].mxu1 }
 0x251   : > { %v2401_v19 = vsub.f32 %v5409_v63, %v2385_v57  ;;  %v2449_v17 = vsub.f32 %v5412_v18, %v2385_v57  ;;  %v2497_v43 = vsub.f32 %v5428_v20, %v2385_v57  ;;  %v2545_v24 = vsub.f32 %v2275_v39, %v2385_v57 }
 0x252   : > { %v2419_v0 = vmul.f32 1.442695, %v2402_v15  ;;  %v2467_v16 = vmul.f32 1.442695, %v2450_v12  ;;  %v2515_v51 = vmul.f32 1.442695, %v2498_v21  ;;  %v2290_v47 = vadd.f32 %v3892_v58, %v5619_v49 }
 0x253   : > { %v2563_v27 = vmul.f32 1.442695, %v2546_v11  ;;  %v2417_v30 = vmul.f32 1.442695, %v2401_v19  ;;  %v2285_v35 = vadd.f32 %v2284_v55, %v5619_v49  ;;  %v2465_v48 = vmul.f32 1.442695, %v2449_v17 }
 0x254   : > { %4203 = vpow2.f32 %v2419_v0  ;;  %v2513_v59 = vmul.f32 1.442695, %v2497_v43  ;;  %v2388_v50 = vmax.f32 %v5464_v42, %v2290_v47  ;;  %v3895_v63 = vpop.f32.mrb[68].mxu1  ;;  %v2561_v18 = vmul.f32 1.442695, %v2545_v24 }
 0x255   : > { %4205 = vpow2.f32 %v2467_v16  ;;  %v2387_v20 = vmax.f32 %v5472_v32, %v2285_v35  ;;  %v2300_v15 = vadd.f32 %v3895_v63, %v5619_v49  ;;  %v2294_v39 = vpop.f32.mrb[69].mxu1 }
 0x256   : > { %4207 = vpow2.f32 %v2515_v51  ;;  %v2404_v58 = vsub.f32 %v5422_v44, %v2388_v50  ;;  %v2452_v57 = vsub.f32 %v5425_v25, %v2388_v50  ;;  %v2500_v55 = vsub.f32 %v5447_v31, %v2388_v50 }
 0x257   : > { %4209 = vpow2.f32 %v2563_v27  ;;  %v2548_v12 = vsub.f32 %v2290_v47, %v2388_v50  ;;  %v2403_v21 = vsub.f32 %v5431_v14, %v2387_v20  ;;  %v2451_v42 = vsub.f32 %v5437_v53, %v2387_v20  ;;  %v3898_v16 = vpop.f32.mrb[70].mxu1 }
 0x258   : > { %4211 = vpow2.f32 %v2417_v30  ;;  %v2423_v24 = vmul.f32 1.442695, %v2404_v58  ;;  %v2471_v32 = vmul.f32 1.442695, %v2452_v57  ;;  %v2519_v11 = vmul.f32 1.442695, %v2500_v55 }
 0x259   : > { %4213 = vpow2.f32 %v2465_v48  ;;  %v2567_v19 = vmul.f32 1.442695, %v2548_v12  ;;  %v2421_v51 = vmul.f32 1.442695, %v2403_v21  ;;  %v2469_v17 = vmul.f32 1.442695, %v2451_v42 }
 0x25a   : > { %4215 = vpow2.f32 %v2513_v59  ;;  %v2499_v44 = vsub.f32 %v5457_v23, %v2387_v20  ;;  %v2547_v25 = vsub.f32 %v2285_v35, %v2387_v20  ;;  %v2390_v31 = vmax.f32 %v5494_v56, %v2300_v15  ;;  %v2304_v27 = vpop.f32.mrb[71].mxu1 }
 0x25b   : > { %4217 = vpow2.f32 %v2561_v18  ;;  %v2295_v14 = vadd.f32 %v2294_v39, %v5619_v49  ;;  %v5664_v53 = vadd.f32 %v3898_v16, %v5619_v49  ;;  %v5667_v43 = vadd.f32 %v2304_v27, %v5619_v49  ;;  %v3901_v0 = vpop.f32.mrb[72].mxu1 }
 0x25c   : > { %4219 = vpow2.f32 %v2423_v24  ;;  %v2517_v47 = vmul.f32 1.442695, %v2499_v44  ;;  %v2565_v30 = vmul.f32 1.442695, %v2547_v25  ;;  %v2406_v48 = vsub.f32 %v5451_v26, %v2390_v31  ;;  %v5670_v23 = vpop.f32.mrb[73].mxu1 }
 0x25d   : > { %4221 = vpow2.f32 %v2471_v32  ;;  %v2454_v56 = vsub.f32 %v5454_v37, %v2390_v31  ;;  %v2502_v35 = vsub.f32 %v5477_v62, %v2390_v31  ;;  %v2550_v59 = vsub.f32 %v2300_v15, %v2390_v31 }
 0x25e   : > { %v5674_v50 = vpop.eup %4203  ;;  %4223 = vpow2.f32 %v2519_v11  ;;  %v2427_v63 = vmul.f32 1.442695, %v2406_v48  ;;  %v2389_v18 = vmax.f32 %v5502_v40, %v2295_v14  ;;  %v2392_v20 = vmax.f32 %v5524_v46, %v5664_v53 }
 0x25f   : > { %v5679_v39 = vpop.eup %4205  ;;  %4225 = vpow2.f32 %v2567_v19  ;;  %v2475_v26 = vmul.f32 1.442695, %v2454_v56  ;;  %v2523_v58 = vmul.f32 1.442695, %v2502_v35  ;;  %v2571_v57 = vmul.f32 1.442695, %v2550_v59 }
 0x260   : > { %v5681_v55 = vpop.eup %4207  ;;  %v2594_v37 = vadd.f32 %v5679_v39, %v5674_v50  ;;  %4227 = vpow2.f32 %v2421_v51  ;;  %v2405_v62 = vsub.f32 %v5461_v1, %v2389_v18  ;;  %v2453_v15 = vsub.f32 %v5467_v10, %v2389_v18  ;;  %v5687_v40 = vpop.f32.mrb[74].mxu1 }
 0x261   : > { %v5689_v12 = vpop.eup %4209  ;;  %4229 = vpow2.f32 %v2469_v17  ;;  %v2501_v46 = vsub.f32 %v5487_v61, %v2389_v18  ;;  %v2549_v21 = vsub.f32 %v2295_v14, %v2389_v18  ;;  %v2408_v42 = vsub.f32 %v5481_v29, %v2392_v20  ;;  %v5693_v16 = vpop.f32.mrb[75].mxu1 }
 0x262   : > { %v5695_v24 = vpop.eup %4211  ;;  %v2610_v32 = vadd.f32 %v5681_v55, %v2594_v37  ;;  %4231 = vpow2.f32 %v2517_v47  ;;  %v2425_v1 = vmul.f32 1.442695, %v2405_v62  ;;  %v2473_v11 = vmul.f32 1.442695, %v2453_v15 }
 0x263   : > { %v5698_v10 = vpop.eup %4213  ;;  %4233 = vpow2.f32 %v2565_v30  ;;  %v2521_v19 = vmul.f32 1.442695, %v2501_v46  ;;  %v2569_v51 = vmul.f32 1.442695, %v2549_v21  ;;  %v2431_v17 = vmul.f32 1.442695, %v2408_v42 }
 0x264   : > { %v5700_v44 = vpop.eup %4215  ;;  %v2626_v61 = vadd.f32 %v5689_v12, %v2610_v32  ;;  %v2593_v29 = vadd.f32 %v5698_v10, %v5695_v24  ;;  %4235 = vpow2.f32 %v2427_v63  ;;  %v2456_v25 = vsub.f32 %v5484_v13, %v2392_v20  ;;  %v5706_v31 = vpop.f32.mrb[76].mxu1 }
 0x265   : > { %v5708_v27 = vpop.eup %4217  ;;  %4237 = vpow2.f32 %v2475_v26  ;;  %v2504_v14 = vsub.f32 %v5507_v54, %v2392_v20  ;;  %v2552_v47 = vsub.f32 %v5664_v53, %v2392_v20  ;;  %v2391_v30 = vmax.f32 %v5532_v22, %v5667_v43  ;;  %v5714_v48 = vpop.f32.mrb[77].mxu1 }
 0x266   : > { %v5716_v56 = vpop.eup %4219  ;;  %4239 = vrcp.f32 %v2626_v61  ;;  %v2609_v35 = vadd.f32 %v5700_v44, %v2593_v29  ;;  %v2479_v13 = vmul.f32 1.442695, %v2456_v25  ;;  %v2320_v59 = vadd.f32 %v3901_v0, %v5619_v49 }
 0x267   : > { %v5720_v63 = vpop.eup %4221  ;;  %4241 = vpow2.f32 %v2523_v58  ;;  %v2527_v18 = vmul.f32 1.442695, %v2504_v14  ;;  %v2575_v54 = vmul.f32 1.442695, %v2552_v47  ;;  %v2407_v53 = vsub.f32 %v5491_v60, %v2391_v30  ;;  %v5723_v20 = vpop.f32.mrb[78].mxu1 }
 0x268   : > { %v5725_v22 = vpop.eup %4223  ;;  %v2625_v26 = vadd.f32 %v5708_v27, %v2609_v35  ;;  %v2596_v37 = vadd.f32 %v5720_v63, %v5716_v56  ;;  %4243 = vpow2.f32 %v2571_v57  ;;  %v2455_v62 = vsub.f32 %v5497_v7, %v2391_v30  ;;  %v5731_v0 = vpop.f32.mrb[79].mxu1 }
 0x269   : > { %v5733_v15 = vpop.eup %4225  ;;  %4245 = vpow2.f32 %v2425_v1  ;;  %v2429_v58 = vmul.f32 1.442695, %v2407_v53  ;;  %v2503_v60 = vsub.f32 %v5517_v3, %v2391_v30  ;;  %v2551_v46 = vsub.f32 %v5667_v43, %v2391_v30 }
 0x26a   : > { %v5737_v21 = vpop.eup %4227  ;;  %4247 = vrcp.f32 %v2625_v26  ;;  %v2612_v42 = vadd.f32 %v5725_v22, %v2596_v37  ;;  %v2477_v32 = vmul.f32 1.442695, %v2455_v62  ;;  %v2394_v57 = vmax.f32 %v5554_v4, %v2320_v59 }
 0x26b   : > { %v5741_v61 = vpop.eup %4229  ;;  %4249 = vpow2.f32 %v2473_v11  ;;  %v2525_v7 = vmul.f32 1.442695, %v2503_v60  ;;  %v5743_v29 = vmul.f32 1.442695, %v2551_v46  ;;  %v2315_v1 = vadd.f32 %v5670_v23, %v5619_v49 }
 0x26c   : > { %v5747_v3 = vpop.eup %4231  ;;  %v2628_v43 = vadd.f32 %v5733_v15, %v2612_v42  ;;  %v2595_v25 = vadd.f32 %v5741_v61, %v5737_v21  ;;  %4251 = vpow2.f32 %v2521_v19  ;;  %v2410_v14 = vsub.f32 %v5511_v9, %v2394_v57 }
 0x26d   : > { %v5753_v4 = vpop.eup %4233  ;;  %4253 = vpow2.f32 %v2569_v51  ;;  %v2458_v11 = vsub.f32 %v5514_v8, %v2394_v57  ;;  %v2506_v47 = vsub.f32 %v5537_v34, %v2394_v57  ;;  %v2554_v30 = vsub.f32 %v2320_v59, %v2394_v57 }
 0x26e   : > { %v5757_v35 = vpop.eup %4235  ;;  %4255 = vrcp.f32 %v2628_v43  ;;  %v2611_v23 = vadd.f32 %v5747_v3, %v2595_v25  ;;  %v2435_v53 = vmul.f32 1.442695, %v2410_v14  ;;  %v2393_v26 = vmax.f32 %v5562_v52, %v2315_v1 }
 0x26f   : > { %v5761_v37 = vpop.eup %4237  ;;  %4257 = vpow2.f32 %v2431_v17  ;;  %v2483_v9 = vmul.f32 1.442695, %v2458_v11  ;;  %v2531_v19 = vmul.f32 1.442695, %v2506_v47  ;;  %v5763_v62 = vmul.f32 1.442695, %v2554_v30 }
 0x270   : > { %v5765_v51 = vpop.eup %4239  ;;  %v2627_v8 = vadd.f32 %v5753_v4, %v2611_v23  ;;  %v2598_v34 = vadd.f32 %v5761_v37, %v5757_v35  ;;  %4259 = vpow2.f32 %v2479_v13  ;;  %v2409_v59 = vsub.f32 %v5521_v6, %v2393_v26 }
 0x271   : > { %v5771_v60 = vpop.eup %4241  ;;  %v5775_v52 = vmul.f32 %v5765_v51, %v5689_v12  ;;  %4261 = vpow2.f32 %v2527_v18  ;;  %v2457_v17 = vsub.f32 %v5527_v38, %v2393_v26  ;;  %v2505_v46 = vsub.f32 %v5547_v28, %v2393_v26 }
 0x272   : > { %v5779_v42 = vpop.eup %4243  ;;  %4263 = vrcp.f32 %v2627_v8  ;;  %v2614_v57 = vadd.f32 %v5771_v60, %v2598_v34  ;;  %v2433_v43 = vmul.f32 1.442695, %v2409_v59  ;;  %v2553_v13 = vsub.f32 %v2315_v1, %v2393_v26  ;;  %v6487_v34 = vld [vmem:[#allocation73_spill] sm:$0xff] }
 0x273   : > { %v5782_v25 = vpop.eup %4245  ;;  %4265 = vpow2.f32 %v2575_v54  ;;  %v2481_v6 = vmul.f32 1.442695, %v2457_v17  ;;  %v5784_v14 = vmul.f32 1.442695, %v2505_v46  ;;  %v2330_v12 = vadd.f32 %v5687_v40, %v5619_v49 }
 0x274   : > { %v5788_v18 = vpop.eup %4247  ;;  %v2630_v38 = vadd.f32 %v5779_v42, %v2614_v57  ;;  %4267 = vpow2.f32 %v2429_v58  ;;  %v5791_v28 = vmul.f32 1.442695, %v2553_v13  ;;  %v2325_v11 = vadd.f32 %v5693_v16, %v5619_v49 }
 0x275   : > { %v5795_v1 = vpop.eup %4249  ;;  %4269 = vpow2.f32 %v2477_v32  ;;  %v2396_v54 = vmax.f32 %v5584_v41, %v2330_v12  ;;  %v2340_v47 = vadd.f32 %v5706_v31, %v5619_v49  ;;  %v5802_v40 = vadd.f32 %v5714_v48, %v5619_v49 }
 0x276   : > { %v5804_v30 = vpop.eup %4251  ;;  %4271 = vrcp.f32 %v2630_v38  ;;  %v2597_v58 = vadd.f32 %v5795_v1, %v5782_v25  ;;  %v2395_v16 = vmax.f32 %v5592_v36, %v2325_v11  ;;  %v5811_v32 = vadd.f32 %v5723_v20, %v5619_v49  ;;  %v6492_v38 = vld [vmem:[#allocation77_spill] sm:$0xff] }
 0x277   : > { %v5813_v41 = vpop.eup %4253  ;;  %4273 = vpow2.f32 %v2525_v7  ;;  %v2412_v31 = vsub.f32 %v5541_v2, %v2396_v54  ;;  %v2460_v48 = vsub.f32 %v5544_v33, %v2396_v54  ;;  %v2508_v23 = vsub.f32 %v5567_v5, %v2396_v54 }
 0x278   : > { %v5818_v26 = vpop.eup %4255  ;;  %v2613_v8 = vadd.f32 %v5804_v30, %v2597_v58  ;;  %4275 = vpow2.f32 %v5743_v29  ;;  %v2556_v36 = vsub.f32 %v2330_v12, %v2396_v54  ;;  %v2411_v59 = vsub.f32 %v6487_v34, %v2395_v16  ;;  %v6491_v12 = vld [vmem:[#allocation74_spill] sm:$0xff] }
 0x279   : > { %v5823_v20 = vpop.eup %4257  ;;  %4277 = vpow2.f32 %v2435_v53  ;;  %v2439_v17 = vmul.f32 1.442695, %v2412_v31  ;;  %v2487_v7 = vmul.f32 1.442695, %v2460_v48  ;;  %v2535_v46 = vmul.f32 1.442695, %v2508_v23 }
 0x27a   : > { %6488 = vst [vmem:[#allocation73_spill] sm:$0xff] %v5823_v20  ;;  %v5825_v2 = vpop.eup %4259  ;;  %v2629_v33 = vadd.f32 %v5813_v41, %v2613_v8  ;;  %4279 = vpow2.f32 %v2483_v9  ;;  %v5828_v5 = vmul.f32 1.442695, %v2556_v36  ;;  %v5830_v57 = vmul.f32 1.442695, %v2411_v59  ;;  %v6493_v48 = vld [vmem:[#allocation86_spill] sm:$0xff] }
 0x27b   : > { %6489 = vst [vmem:[#allocation91_spill] sm:$0xff] %v5825_v2  ;;  %v5832_v13 = vpop.eup %4261  ;;  %v2600_v29 = vadd.f32 %v5825_v2, %v5823_v20  ;;  %4281 = vpow2.f32 %v2531_v19  ;;  %v2459_v53 = vsub.f32 %v6491_v12, %v2395_v16  ;;  %v2507_v54 = vsub.f32 %v6492_v38, %v2395_v16 }
 0x27c   : > { %6490 = vst [vmem:[#allocation92_spill] sm:$0xff] %v5832_v13  ;;  %v5838_v58 = vpop.eup %4263  ;;  %4283 = vrcp.f32 %v2629_v33  ;;  %v2555_v31 = vsub.f32 %v2325_v11, %v2395_v16  ;;  %v2398_v9 = vmax.f32 %v5614_v45, %v2340_v47  ;;  %v2397_v23 = vmax.f32 %v6493_v48, %v5802_v40  ;;  %v6495_v11 = vld [vmem:[#allocation75_spill] sm:$0xff]  ;;  %v6496_v45 = vld [vmem:[#allocation76_spill] sm:$0xff] }
 0x27d   : > { %v5843_v8 = vpop.eup %4265  ;;  %v2616_v36 = vadd.f32 %v5832_v13, %v2600_v29  ;;  %4285 = vpow2.f32 %v5763_v62  ;;  %v2485_v19 = vmul.f32 1.442695, %v2459_v53  ;;  %v5847_v34 = vmul.f32 1.442695, %v2507_v54  ;;  %v6498_v29 = vld [vmem:[#allocation80_spill] sm:$0xff] }
 0x27e   : > { %6494 = vst [vmem:[#allocation74_spill] sm:$0xff] %v5843_v8  ;;  %v5849_v59 = vpop.eup %4267  ;;  %4287 = vpow2.f32 %v2433_v43  ;;  %v5851_v12 = vmul.f32 1.442695, %v2555_v31  ;;  %v2414_v16 = vsub.f32 %v6495_v11, %v2398_v9  ;;  %v2462_v33 = vsub.f32 %v6496_v45, %v2398_v9 }
 0x27f   : > { %v5855_v38 = vpop.eup %4269  ;;  %v2632_v48 = vadd.f32 %v5843_v8, %v2616_v36  ;;  %4289 = vpow2.f32 %v2481_v6  ;;  %v2510_v13 = vsub.f32 %v6498_v29, %v2398_v9  ;;  %v2558_v62 = vsub.f32 %v2340_v47, %v2398_v9  ;;  %v6500_v6 = vld [vmem:[#allocation78_spill] sm:$0xff]  ;;  %v6502_v8 = vld [vmem:[#allocation79_spill] sm:$0xff] }
 0x280   : > { %6497 = vst [vmem:[#allocation77_spill] sm:$0xff] %v5855_v38  ;;  %v5859_v53 = vpop.eup %4271  ;;  %v2599_v54 = vadd.f32 %v5855_v38, %v5849_v59  ;;  %4291 = vpow2.f32 %v5784_v14  ;;  %v2443_v43 = vmul.f32 1.442695, %v2414_v16  ;;  %v5864_v31 = vmul.f32 1.442695, %v2462_v33  ;;  %v6503_v16 = vld [vmem:[#allocation83_spill] sm:$0xff] }
 0x281   : > { %v5866_v11 = vpop.eup %4273  ;;  %4293 = vrcp.f32 %v2632_v48  ;;  %v5868_v45 = vmul.f32 1.442695, %v2510_v13  ;;  %v5870_v36 = vmul.f32 1.442695, %v2558_v62  ;;  %v2413_v29 = vsub.f32 %v6500_v6, %v2397_v23  ;;  %v6505_v62 = vld [vmem:[#allocation89_spill] sm:$0xff] }
 0x282   : > { %6499 = vst [vmem:[#allocation86_spill] sm:$0xff] %v5866_v11  ;;  %v5873_v47 = vpop.eup %4275  ;;  %v2615_v9 = vadd.f32 %v5866_v11, %v2599_v54  ;;  %4295 = vpow2.f32 %v5791_v28  ;;  %v2461_v14 = vsub.f32 %v6502_v8, %v2397_v23  ;;  %v2509_v33 = vsub.f32 %v6503_v16, %v2397_v23  ;;  %v6509_v11 = vld [vmem:[#allocation82_spill] sm:$0xff] }
 0x283   : > { %6501 = vst [vmem:[#allocation75_spill] sm:$0xff] %v5873_v47  ;;  %v5879_v2 = vpop.eup %4277  ;;  %4297 = vpow2.f32 %v2439_v17  ;;  %v5881_v48 = vmul.f32 1.442695, %v2413_v29  ;;  %v2557_v13 = vsub.f32 %v5802_v40, %v2397_v23  ;;  %v2400_v6 = vmax.f32 %v6505_v62, %v5811_v32  ;;  %v6508_v40 = vld [vmem:[#allocation81_spill] sm:$0xff] }
 0x284   : > { %6504 = vst [vmem:[#allocation76_spill] sm:$0xff] %v5879_v2  ;;  %v5886_v20 = vpop.eup %4279  ;;  %v2631_v54 = vadd.f32 %v5873_v47, %v2615_v9  ;;  %4299 = vpow2.f32 %v2487_v7  ;;  %v5889_v28 = vmul.f32 1.442695, %v2461_v14  ;;  %v5891_v8 = vmul.f32 1.442695, %v2509_v33  ;;  %v6510_v7 = vld [vmem:[#allocation87_spill] sm:$0xff] }
 0x285   : > { %6506 = vst [vmem:[#allocation80_spill] sm:$0xff] %v5886_v20  ;;  %v5893_v16 = vpop.eup %4281  ;;  %v2602_v17 = vadd.f32 %v5886_v20, %v5879_v2  ;;  %4301 = vpow2.f32 %v2535_v46  ;;  %v5897_v29 = vmul.f32 1.442695, %v2557_v13  ;;  %v2416_v23 = vsub.f32 %v6508_v40, %v2400_v6 }
 0x286   : > { %6507 = vst [vmem:[#allocation78_spill] sm:$0xff] %v5893_v16  ;;  %v5900_v62 = vpop.eup %4283  ;;  %4303 = vrcp.f32 %v2631_v54  ;;  %v2464_v9 = vsub.f32 %v6509_v11, %v2400_v6  ;;  %v2512_v14 = vsub.f32 %v6510_v7, %v2400_v6  ;;  %v2560_v33 = vsub.f32 %v5811_v32, %v2400_v6 }
 0x287   : > { %v5905_v47 = vpop.eup %4285  ;;  %v2618_v38 = vadd.f32 %v5893_v16, %v2602_v17  ;;  %4305 = vpow2.f32 %v5828_v5  ;;  %v5909_v46 = vmul.f32 1.442695, %v2416_v23  ;;  %v2345_v13 = vadd.f32 %v5731_v0, %v5619_v49  ;;  %v6513_v5 = vld [vmem:[#allocation90_spill] sm:$0xff] }
 0x288   : > { %6511 = vst [vmem:[#allocation79_spill] sm:$0xff] %v5905_v47  ;;  %v5913_v40 = vpop.eup %4287  ;;  %4307 = vpow2.f32 %v5830_v57  ;;  %v5916_v11 = vmul.f32 1.442695, %v2464_v9  ;;  %v5918_v54 = vmul.f32 1.442695, %v2512_v14  ;;  %v2657_v49 = vmul.f32 %v5788_v18, %v5695_v24 }
 0x289   : > { %v5920_v32 = vmul.f32 1.442695, %v2560_v33  ;;  %v5922_v6 = vpop.eup %4289  ;;  %v2634_v17 = vadd.f32 %v5905_v47, %v2618_v38  ;;  %4309 = vpow2.f32 %v2485_v19  ;;  %v2399_v23 = vmax.f32 %v6513_v5, %v2345_v13  ;;  %v6514_v19 = vld [vmem:[#allocation84_spill] sm:$0xff]  ;;  %v6515_v33 = vld [vmem:[#allocation85_spill] sm:$0xff] }
 0x28a   : > { %6512 = vst [vmem:[#allocation83_spill] sm:$0xff] %v5922_v6  ;;  %v5928_v0 = vpop.eup %4291  ;;  %v2601_v57 = vadd.f32 %v5922_v6, %v5913_v40  ;;  %4311 = vpow2.f32 %v5847_v34  ;;  %v2705_v9 = vmul.f32 %v5788_v18, %v5698_v10  ;;  %v2753_v7 = vmul.f32 %v5788_v18, %v5700_v44  ;;  %v6516_v5 = vld [vmem:[#allocation88_spill] sm:$0xff]  ;;  %v6517_v10 = vld [vmem:[#allocation10_spill] sm:$0xff] }
 0x28b   : > { %v5937_v38 = vpop.eup %4293  ;;  %4313 = vrcp.f32 %v2634_v17  ;;  %v2415_v14 = vsub.f32 %v6514_v19, %v2399_v23  ;;  %v2463_v24 = vsub.f32 %v6515_v33, %v2399_v23  ;;  %v2511_v47 = vsub.f32 %v6516_v5, %v2399_v23 }
 0x28c   : > { %v5942_v16 = vpop.eup %4295  ;;  %v2617_v20 = vadd.f32 %v5928_v0, %v2601_v57  ;;  %4315 = vpow2.f32 %v5851_v12  ;;  %v2559_v34 = vsub.f32 %v2345_v13, %v2399_v23  ;;  %v2673_v2 = vmul.f32 %v2657_v49, %v6517_v10  ;;  %v6518_v12 = vld [vmem:[#allocation26_spill] sm:$0xff]  ;;  %v6519_v49 = vld [vmem:[#allocation29_spill] sm:$0xff] }
 0x28d   : > { %v5947_v6 = vpop.eup %4297  ;;  %4317 = vpow2.f32 %v2443_v43  ;;  %v5949_v44 = vmul.f32 1.442695, %v2415_v14  ;;  %v5951_v17 = vmul.f32 1.442695, %v2463_v24  ;;  %v5953_v19 = vmul.f32 1.442695, %v2511_v47 }
 0x28e   : > { %v5955_v33 = vpop.eup %4299  ;;  %v2633_v5 = vadd.f32 %v5942_v16, %v2617_v20  ;;  %4319 = vpow2.f32 %v5864_v31  ;;  %v5959_v57 = vmul.f32 1.442695, %v2559_v34  ;;  %v2721_v13 = vmul.f32 %v2705_v9, %v6518_v12  ;;  %v6522_v12 = vld [vmem:[#allocation25_spill] sm:$0xff] }
 0x28f   : > { %v5962_v23 = vpop.eup %4301  ;;  %v2604_v43 = vadd.f32 %v5955_v33, %v5947_v6  ;;  %4321 = vpow2.f32 %v5868_v45  ;;  %v2769_v47 = vmul.f32 %v2753_v7, %v6519_v49  ;;  %v2801_v14 = vmul.f32 %v5788_v18, %v5708_v27  ;;  %v6520_v45 = vld [vmem:[#allocation58_spill] sm:$0xff] }
 0x290   : > { %v5970_v24 = vpop.eup %4303  ;;  %4323 = vrcp.f32 %v2633_v5  ;;  %v2737_v20 = vadd.f32 %v2721_v13, %v2673_v2  ;;  %v2658_v31 = vmul.f32 %v5765_v51, %v5674_v50  ;;  %v2706_v9 = vmul.f32 %v5765_v51, %v5679_v39  ;;  %v6521_v50 = vld [vmem:[#allocation9_spill] sm:$0xff] }
 0x291   : > { %v5976_v34 = vpop.eup %4305  ;;  %v2620_v10 = vadd.f32 %v5962_v23, %v2604_v43  ;;  %4325 = vpow2.f32 %v5870_v36  ;;  %v2817_v7 = vmul.f32 %v2801_v14, %v6520_v45  ;;  %v2754_v27 = vmul.f32 %v5765_v51, %v5681_v55  ;;  %v6523_v36 = vld [vmem:[#allocation27_spill] sm:$0xff]  ;;  %v6524_v14 = vld [vmem:[#allocation56_spill] sm:$0xff] }
 0x292   : > { %v5983_v18 = vpop.eup %4307  ;;  %4327 = vpow2.f32 %v5881_v48  ;;  %v2785_v2 = vadd.f32 %v2769_v47, %v2737_v20  ;;  %v2674_v5 = vmul.f32 %v6521_v50, %v2658_v31  ;;  %v2722_v39 = vmul.f32 %v6522_v12, %v2706_v9 }
 0x293   : > { %v5988_v13 = vpop.eup %4309  ;;  %v2636_v43 = vadd.f32 %v5976_v34, %v2620_v10  ;;  %4329 = vpow2.f32 %v5889_v28  ;;  %v2770_v49 = vmul.f32 %v6523_v36, %v2754_v27  ;;  %v2818_v55 = vmul.f32 %v6524_v14, %v5775_v52 }
 0x294   : > { %v5995_v51 = vpop.eup %4311  ;;  %v2603_v48 = vadd.f32 %v5988_v13, %v5983_v18  ;;  %4331 = vpow2.f32 %v5891_v8  ;;  %v2833_v47 = vadd.f32 %v2817_v7, %v2785_v2  ;;  %v2738_v20 = vadd.f32 %v2722_v39, %v2674_v5  ;;  %v6526_v2 = vld [vmem:[#allocation30_spill] sm:$0xff] }
 0x295   : > { %v6000_v31 = vpop.eup %4313  ;;  %4333 = vrcp.f32 %v2636_v43  ;;  %v2659_v28 = vmul.f32 %v5838_v58, %v5737_v21  ;;  %v2707_v9 = vmul.f32 %v5838_v58, %v5741_v61  ;;  %v2755_v52 = vmul.f32 %v5838_v58, %v5747_v3  ;;  %v6525_v21 = vld [vmem:[#allocation12_spill] sm:$0xff]  ;;  %v6527_v3 = vld [vmem:[#allocation33_spill] sm:$0xff] }
 0x296   : > { %v6008_v10 = vpop.eup %4315  ;;  %v2619_v45 = vadd.f32 %v5995_v51, %v2603_v48  ;;  %4335 = vpow2.f32 %v5897_v29  ;;  %3943 = vmatprep.mubr.f32.mxu0 %v2833_v47  ;;  %v2786_v8 = vadd.f32 %v2770_v49, %v2738_v20  ;;  %v2803_v7 = vmul.f32 %v5838_v58, %v5753_v4  ;;  %v6528_v43 = vld [vmem:[#allocation60_spill] sm:$0xff]  ;;  %v6529_v20 = vld [vmem:[#allocation11_spill] sm:$0xff] }
 0x297   : > { %v6014_v27 = vpop.eup %4317  ;;  %4337 = vpow2.f32 %v5909_v46  ;;  %v2675_v61 = vmul.f32 %v2659_v28, %v6525_v21  ;;  %v2723_v50 = vmul.f32 %v2707_v9, %v6526_v2  ;;  %v2771_v5 = vmul.f32 %v2755_v52, %v6527_v3 }
 0x298   : > { %v6020_v12 = vpop.eup %4319  ;;  %v2635_v39 = vadd.f32 %v6008_v10, %v2619_v45  ;;  %4339 = vpow2.f32 %v5916_v11  ;;  %v2834_v29 = vadd.f32 %v2818_v55, %v2786_v8  ;;  %v2819_v36 = vmul.f32 %v2803_v7, %v6528_v43  ;;  %v6531_v45 = vld [vmem:[#allocation31_spill] sm:$0xff] }
 0x299   : > { %v6025_v4 = vpop.eup %4321  ;;  %v2606_v58 = vadd.f32 %v6020_v12, %v6014_v27  ;;  %4341 = vpow2.f32 %v5918_v54  ;;  %v2739_v46 = vadd.f32 %v2723_v50, %v2675_v61  ;;  %v2660_v49 = vmul.f32 %v5818_v26, %v5716_v56  ;;  %v6532_v8 = vld [vmem:[#allocation59_spill] sm:$0xff] }
 0x29a   : > { %v6032_v14 = vpop.eup %4323  ;;  %4343 = vrcp.f32 %v2635_v39  ;;  %3944 = vmatmul.mubr.f32.vlgmr.msra.gmra.mrb[64].mxu0 %v2834_v29  ;;  %v2708_v11 = vmul.f32 %v5818_v26, %v5720_v63  ;;  %v2756_v55 = vmul.f32 %v5818_v26, %v5725_v22  ;;  %v2804_v48 = vmul.f32 %v5818_v26, %v5733_v15  ;;  %v6530_v63 = vld [vmem:[#allocation28_spill] sm:$0xff] }
 0x29b   : > { %v6040_v47 = vpop.eup %4325  ;;  %v2622_v54 = vadd.f32 %v6025_v4, %v2606_v58  ;;  %4345 = vpow2.f32 %v5920_v32  ;;  %v2787_v56 = vadd.f32 %v2771_v5, %v2739_v46  ;;  %v2676_v28 = vmul.f32 %v6529_v20, %v2660_v49  ;;  %v6535_v46 = vld [vmem:[#allocation37_spill] sm:$0xff] }
 0x29c   : > { %v6045_v9 = vpop.eup %4327  ;;  %4347 = vpow2.f32 %v5949_v44  ;;  %v2724_v52 = vmul.f32 %v6530_v63, %v2708_v11  ;;  %v2772_v22 = vmul.f32 %v6531_v45, %v2756_v55  ;;  %v2820_v7 = vmul.f32 %v6532_v8, %v2804_v48  ;;  %v6536_v11 = vld [vmem:[#allocation62_spill] sm:$0xff]  ;;  %v6537_v63 = vld [vmem:[#allocation13_spill] sm:$0xff] }
 0x29d   : > { %v6051_v15 = vpop.eup %4329  ;;  %v2638_v26 = vadd.f32 %v6040_v47, %v2622_v54  ;;  %4349 = vpow2.f32 %v5951_v17  ;;  %v2835_v32 = vadd.f32 %v2819_v36, %v2787_v56  ;;  %v2661_v21 = vmul.f32 %v5900_v62, %v5782_v25  ;;  %v6533_v17 = vld [vmem:[#allocation14_spill] sm:$0xff] }
 0x29e   : > { %v6057_v61 = vpop.eup %4331  ;;  %v2605_v44 = vadd.f32 %v6051_v15, %v6045_v9  ;;  %4351 = vpow2.f32 %v5953_v19  ;;  %v2740_v2 = vadd.f32 %v2724_v52, %v2676_v28  ;;  %v2709_v50 = vmul.f32 %v5900_v62, %v5795_v1  ;;  %v6534_v1 = vld [vmem:[#allocation34_spill] sm:$0xff] }
 0x29f   : > { %v6064_v3 = vpop.eup %4333  ;;  %4353 = vrcp.f32 %v2638_v26  ;;  %3946 = vmatprep.mubr.f32.mxu0 %v2835_v32  ;;  %v2677_v5 = vmul.f32 %v2661_v21, %v6533_v17  ;;  %v2757_v25 = vmul.f32 %v5900_v62, %v5804_v30  ;;  %v2805_v39 = vmul.f32 %v5900_v62, %v5813_v41  ;;  %v6541_v17 = vld [vmem:[#allocation77_spill] sm:$0xff] }
 0x2a0   : > { %v6071_v29 = vpop.eup %4335  ;;  %v2621_v19 = vadd.f32 %v6057_v61, %v2605_v44  ;;  %4355 = vpow2.f32 %v5959_v57  ;;  %v2788_v43 = vadd.f32 %v2772_v22, %v2740_v2  ;;  %v2725_v36 = vmul.f32 %v2709_v50, %v6534_v1  ;;  %v6540_v2 = vld [vmem:[#allocation61_spill] sm:$0xff]  ;;  %v6544_v1 = vld [vmem:[#allocation75_spill] sm:$0xff] }
 0x2a1   : > { %v6076_v58 = vpop.eup %4337  ;;  %v2773_v49 = vmul.f32 %v2757_v25, %v6535_v46  ;;  %v2821_v55 = vmul.f32 %v2805_v39, %v6536_v11  ;;  %v2662_v30 = vmul.f32 %v5859_v53, %v5757_v35  ;;  %v2710_v41 = vmul.f32 %v5859_v53, %v5761_v37  ;;  %v6538_v35 = vld [vmem:[#allocation32_spill] sm:$0xff]  ;;  %v6545_v11 = vld [vmem:[#allocation38_spill] sm:$0xff] }
 0x2a2   : > { %v6084_v62 = vpop.eup %4339  ;;  %v2637_v48 = vadd.f32 %v6071_v29, %v2621_v19  ;;  %v2836_v57 = vadd.f32 %v2820_v7, %v2788_v43  ;;  %v2741_v54 = vadd.f32 %v2725_v36, %v2677_v5  ;;  %v2758_v56 = vmul.f32 %v5859_v53, %v5771_v60  ;;  %v6539_v7 = vld [vmem:[#allocation35_spill] sm:$0xff]  ;;  %v6542_v25 = vld [vmem:[#allocation16_spill] sm:$0xff]  ;;  %v6543_v19 = vld [vmem:[#allocation86_spill] sm:$0xff] }
 0x2a3   : > { %v6089_v20 = vpop.eup %4341  ;;  %v2608_v28 = vadd.f32 %v6084_v62, %v6076_v58  ;;  %v2678_v52 = vmul.f32 %v6537_v63, %v2662_v30  ;;  %v2726_v45 = vmul.f32 %v6538_v35, %v2710_v41  ;;  %v2806_v37 = vmul.f32 %v5859_v53, %v5779_v42  ;;  %v6546_v41 = vld [vmem:[#allocation73_spill] sm:$0xff]  ;;  %v6549_v63 = vld [vmem:[#allocation91_spill] sm:$0xff] }
 0x2a4   : > { %v6097_v22 = vpop.eup %4343  ;;  %4357 = vrcp.f32 %v2637_v48  ;;  %3947 = vmatmul.mubr.f32.gmra.mrb[66].mxu0 %v2836_v57  ;;  %v2789_v8 = vadd.f32 %v2773_v49, %v2741_v54  ;;  %v2774_v26 = vmul.f32 %v6539_v7, %v2758_v56  ;;  %v2663_v60 = vmul.f32 %v5970_v24, %v5849_v59  ;;  %v6547_v54 = vld [vmem:[#allocation41_spill] sm:$0xff] }
 0x2a5   : > { %v6102_v32 = vpop.eup %4345  ;;  %v2624_v21 = vadd.f32 %v6089_v20, %v2608_v28  ;;  %v2742_v44 = vadd.f32 %v2726_v45, %v2678_v52  ;;  %v2822_v50 = vmul.f32 %v6540_v2, %v2806_v37  ;;  %v2711_v42 = vmul.f32 %v5970_v24, %v6541_v17  ;;  %v6548_v28 = vld [vmem:[#allocation64_spill] sm:$0xff] }
 0x2a6   : > { %v6108_v53 = vpop.eup %4347  ;;  %v2837_v5 = vadd.f32 %v2821_v55, %v2789_v8  ;;  %v2679_v39 = vmul.f32 %v2663_v60, %v6542_v25  ;;  %v2759_v43 = vmul.f32 %v5970_v24, %v6543_v19  ;;  %v2807_v59 = vmul.f32 %v5970_v24, %v6544_v1  ;;  %v6550_v8 = vld [vmem:[#allocation15_spill] sm:$0xff]  ;;  %v6552_v2 = vld [vmem:[#allocation92_spill] sm:$0xff] }
 0x2a7   : > { %v6115_v36 = vpop.eup %4349  ;;  %v2640_v46 = vadd.f32 %v6102_v32, %v2624_v21  ;;  %v2790_v49 = vadd.f32 %v2774_v26, %v2742_v44  ;;  %v2727_v30 = vmul.f32 %v2711_v42, %v6545_v11  ;;  %v2664_v48 = vmul.f32 %v5937_v38, %v6546_v41  ;;  %v6551_v21 = vld [vmem:[#allocation36_spill] sm:$0xff]  ;;  %v6553_v42 = vld [vmem:[#allocation74_spill] sm:$0xff]  ;;  %v6556_v11 = vld [vmem:[#allocation63_spill] sm:$0xff] }
 0x2a8   : > { %v6121_v57 = vpop.eup %4351  ;;  %v2607_v55 = vadd.f32 %v6115_v36, %v6108_v53  ;;  %3949 = vmatprep.mubr.f32.mxu0 %v2837_v5  ;;  %v2775_v56 = vmul.f32 %v2759_v43, %v6547_v54  ;;  %v2823_v24 = vmul.f32 %v2807_v59, %v6548_v28  ;;  %v2712_v52 = vmul.f32 %v5937_v38, %v6549_v63 }
 0x2a9   : > { %v6129_v35 = vpop.eup %4353  ;;  %4359 = vrcp.f32 %v2640_v46  ;;  %v2838_v45 = vadd.f32 %v2822_v50, %v2790_v49  ;;  %v2743_v37 = vadd.f32 %v2727_v30, %v2679_v39  ;;  %v2680_v7 = vmul.f32 %v6550_v8, %v2664_v48  ;;  %v6554_v39 = vld [vmem:[#allocation83_spill] sm:$0xff]  ;;  %v6561_v8 = vld [vmem:[#allocation80_spill] sm:$0xff] }
 0x2aa   : > { %v6132_v26 = vpop.eup %4355  ;;  %v2623_v60 = vadd.f32 %v6121_v57, %v2607_v55  ;;  %v2728_v44 = vmul.f32 %v6551_v21, %v2712_v52  ;;  %v2760_v17 = vmul.f32 %v5937_v38, %v6552_v2  ;;  %v2808_v5 = vmul.f32 %v5937_v38, %v6553_v42  ;;  %v6555_v46 = vld [vmem:[#allocation39_spill] sm:$0xff]  ;;  %v6557_v38 = vld [vmem:[#allocation18_spill] sm:$0xff]  ;;  %v6560_v52 = vld [vmem:[#allocation76_spill] sm:$0xff] }
 0x2ab   : > { %3950 = vmatmul.mubr.f32.gmra.mrb[68].mxu0 %v2838_v45  ;;  %v2791_v25 = vadd.f32 %v2775_v56, %v2743_v37  ;;  %v2665_v50 = vmul.f32 %v6032_v14, %v5913_v40  ;;  %v2713_v19 = vmul.f32 %v6032_v14, %v6554_v39  ;;  %v2761_v43 = vmul.f32 %v6032_v14, %v5928_v0  ;;  %v6558_v55 = vld [vmem:[#allocation42_spill] sm:$0xff]  ;;  %v6559_v56 = vld [vmem:[#allocation45_spill] sm:$0xff]  ;;  %v6563_v21 = vld [vmem:[#allocation79_spill] sm:$0xff] }
 0x2ac   : > { %v2639_v1 = vadd.f32 %v6132_v26, %v2623_v60  ;;  %v2744_v59 = vadd.f32 %v2728_v44, %v2680_v7  ;;  %v2776_v49 = vmul.f32 %v6555_v46, %v2760_v17  ;;  %v2824_v30 = vmul.f32 %v6556_v11, %v2808_v5  ;;  %v6562_v7 = vld [vmem:[#allocation78_spill] sm:$0xff]  ;;  %v6565_v5 = vld [vmem:[#allocation17_spill] sm:$0xff]  ;;  %v6569_v46 = vld [vmem:[#allocation20_spill] sm:$0xff] }
 0x2ad   : > { %v2839_v41 = vadd.f32 %v2823_v24, %v2791_v25  ;;  %v2681_v48 = vmul.f32 %v2665_v50, %v6557_v38  ;;  %v2729_v54 = vmul.f32 %v2713_v19, %v6558_v55  ;;  %v2777_v40 = vmul.f32 %v2761_v43, %v6559_v56  ;;  %v6564_v17 = vld [vmem:[#allocation66_spill] sm:$0xff]  ;;  %v6566_v50 = vld [vmem:[#allocation40_spill] sm:$0xff]  ;;  %v6567_v19 = vld [vmem:[#allocation43_spill] sm:$0xff] }
 0x2ae   : > { %v4358_v28 = vpop.eup %4357  ;;  %4361 = vrcp.f32 %v2639_v1  ;;  %v2792_v63 = vadd.f32 %v2776_v49, %v2744_v59  ;;  %v2809_v0 = vmul.f32 %v6032_v14, %v5942_v16  ;;  %v2666_v45 = vmul.f32 %v6000_v31, %v6560_v52  ;;  %v6568_v1 = vld [vmem:[#allocation65_spill] sm:$0xff] }
 0x2af   : > { %3952 = vmatprep.mubr.f32.mxu0 %v2839_v41  ;;  %v2745_v37 = vadd.f32 %v2729_v54, %v2681_v48  ;;  %v2714_v24 = vmul.f32 %v6000_v31, %v6561_v8  ;;  %v2762_v60 = vmul.f32 %v6000_v31, %v6562_v7  ;;  %v2810_v44 = vmul.f32 %v6000_v31, %v6563_v21  ;;  %v6570_v54 = vld [vmem:[#allocation46_spill] sm:$0xff] }
 0x2b0   : > { %v2840_v2 = vadd.f32 %v2824_v30, %v2792_v63  ;;  %v2825_v42 = vmul.f32 %v2809_v0, %v6564_v17  ;;  %v2682_v25 = vmul.f32 %v6565_v5, %v2666_v45  ;;  %v2667_v16 = vmul.f32 %v6097_v22, %v5983_v18  ;;  %v6574_v45 = vld [vmem:[#allocation44_spill] sm:$0xff] }
 0x2b1   : > { %v2793_v14 = vadd.f32 %v2777_v40, %v2745_v37  ;;  %v2730_v39 = vmul.f32 %v6566_v50, %v2714_v24  ;;  %v2778_v43 = vmul.f32 %v6567_v19, %v2762_v60  ;;  %v2826_v59 = vmul.f32 %v6568_v1, %v2810_v44  ;;  %v6571_v40 = vld [vmem:[#allocation49_spill] sm:$0xff]  ;;  %v6580_v1 = vld [vmem:[#allocation70_spill] sm:$0xff] }
 0x2b2   : > { %3953 = vmatmul.mubr.f32.gmra.mrb[70].mxu0 %v2840_v2  ;;  %v2683_v49 = vmul.f32 %v2667_v16, %v6569_v46  ;;  %v2715_v31 = vmul.f32 %v6097_v22, %v5988_v13  ;;  %v2763_v11 = vmul.f32 %v6097_v22, %v5995_v51  ;;  %v2811_v30 = vmul.f32 %v6097_v22, %v6008_v10  ;;  %v6572_v13 = vld [vmem:[#allocation68_spill] sm:$0xff]  ;;  %v6573_v22 = vld [vmem:[#allocation19_spill] sm:$0xff] }
 0x2b3   : > { %v4360_v18 = vpop.eup %4359  ;;  %v2841_v41 = vadd.f32 %v2825_v42, %v2793_v14  ;;  %v2746_v38 = vadd.f32 %v2730_v39, %v2682_v25  ;;  %v2668_v48 = vmul.f32 %v6064_v3, %v5947_v6  ;;  %v2716_v55 = vmul.f32 %v6064_v3, %v5955_v33  ;;  %v6575_v33 = vld [vmem:[#allocation47_spill] sm:$0xff]  ;;  %v6577_v25 = vld [vmem:[#allocation22_spill] sm:$0xff]  ;;  %v6579_v39 = vld [vmem:[#allocation53_spill] sm:$0xff] }
 0x2b4   : > { %v2731_v56 = vmul.f32 %v2715_v31, %v6570_v54  ;;  %v2779_v63 = vmul.f32 %v2763_v11, %v6571_v40  ;;  %v2827_v0 = vmul.f32 %v2811_v30, %v6572_v13  ;;  %v2764_v51 = vmul.f32 %v6064_v3, %v5962_v23  ;;  %v6576_v2 = vld [vmem:[#allocation67_spill] sm:$0xff]  ;;  %v6578_v14 = vld [vmem:[#allocation50_spill] sm:$0xff]  ;;  %v6581_v31 = vld [vmem:[#allocation21_spill] sm:$0xff] }
 0x2b5   : > { %3955 = vmatprep.mubr.f32.mxu0 %v2841_v41  ;;  %v2794_v10 = vadd.f32 %v2778_v43, %v2746_v38  ;;  %v2684_v52 = vmul.f32 %v6573_v22, %v2668_v48  ;;  %v2732_v37 = vmul.f32 %v6574_v45, %v2716_v55  ;;  %v2812_v6 = vmul.f32 %v6064_v3, %v5976_v34  ;;  %v6583_v41 = vld [vmem:[#allocation51_spill] sm:$0xff]  ;;  %v6584_v54 = vld [vmem:[#allocation69_spill] sm:$0xff]  ;;  %v6585_v13 = vld [vmem:[#allocation24_spill] sm:$0xff] }
 0x2b6   : > { %v2747_v8 = vadd.f32 %v2731_v56, %v2683_v49  ;;  %v2780_v24 = vmul.f32 %v6575_v33, %v2764_v51  ;;  %v2669_v7 = vmul.f32 %v4358_v28, %v6045_v9  ;;  %v2717_v60 = vmul.f32 %v4358_v28, %v6051_v15  ;;  %v6587_v22 = vld [vmem:[#allocation57_spill] sm:$0xff] }
 0x2b7   : > { %v2842_v21 = vadd.f32 %v2826_v59, %v2794_v10  ;;  %v2748_v44 = vadd.f32 %v2732_v37, %v2684_v52  ;;  %v2828_v23 = vmul.f32 %v6576_v2, %v2812_v6  ;;  %v2765_v17 = vmul.f32 %v4358_v28, %v6057_v61  ;;  %v6588_v52 = vld [vmem:[#allocation72_spill] sm:$0xff]  ;;  %v6589_v6 = vld [vmem:[#allocation23_spill] sm:$0xff] }
 0x2b8   : > { %v4362_v42 = vpop.eup %4361  ;;  %v2795_v5 = vadd.f32 %v2779_v63, %v2747_v8  ;;  %v2685_v16 = vmul.f32 %v2669_v7, %v6577_v25  ;;  %v2733_v50 = vmul.f32 %v2717_v60, %v6578_v14  ;;  %v2813_v34 = vmul.f32 %v4358_v28, %v6071_v29  ;;  %v6582_v28 = vld [vmem:[#allocation48_spill] sm:$0xff]  ;;  %v6591_v60 = vld [vmem:[#allocation55_spill] sm:$0xff] }
 0x2b9   : > { %3956 = vmatmul.mubr.f32.gmra.mrb[72].mxu0 %v2842_v21  ;;  %v2796_v3 = vadd.f32 %v2780_v24, %v2748_v44  ;;  %v2781_v9 = vmul.f32 %v2765_v17, %v6579_v39  ;;  %v2670_v15 = vmul.f32 %v6129_v35, %v6014_v27  ;;  %v2718_v19 = vmul.f32 %v6129_v35, %v6020_v12  ;;  %v6590_v24 = vld [vmem:[#allocation52_spill] sm:$0xff]  ;;  %v6592_v44 = vld [vmem:[#allocation71_spill] sm:$0xff] }
 0x2ba   : > { %v2843_v43 = vadd.f32 %v2827_v0, %v2795_v5  ;;  %v2749_v61 = vadd.f32 %v2733_v50, %v2685_v16  ;;  %v2829_v59 = vmul.f32 %v2813_v34, %v6580_v1  ;;  %v2766_v46 = vmul.f32 %v6129_v35, %v6025_v4 }
 0x2bb   : > { %v2844_v49 = vadd.f32 %v2828_v23, %v2796_v3  ;;  %v2686_v29 = vmul.f32 %v6581_v31, %v2670_v15  ;;  %v2734_v11 = vmul.f32 %v6582_v28, %v2718_v19  ;;  %v2814_v30 = vmul.f32 %v6129_v35, %v6040_v47  ;;  %v6586_v47 = vld [vmem:[#allocation54_spill] sm:$0xff] }
 0x2bc   : > { %3958 = vmatprep.mubr.f32.mxu0 %v2843_v43  ;;  %v2797_v27 = vadd.f32 %v2781_v9, %v2749_v61  ;;  %v2782_v38 = vmul.f32 %v6583_v41, %v2766_v46  ;;  %v2671_v12 = vmul.f32 %v4362_v42, %v6108_v53  ;;  %v2719_v48 = vmul.f32 %v4362_v42, %v6115_v36 }
 0x2bd   : > { %3959 = vmatmul.mubr.f32.gmra.mrb[74].mxu0 %v2844_v49  ;;  %v2750_v55 = vadd.f32 %v2734_v11, %v2686_v29  ;;  %v2830_v4 = vmul.f32 %v6584_v54, %v2814_v30  ;;  %v2767_v56 = vmul.f32 %v4362_v42, %v6121_v57  ;;  %v2815_v40 = vmul.f32 %v4362_v42, %v6132_v26 }
 0x2be   : > { %v2845_v63 = vadd.f32 %v2829_v59, %v2797_v27  ;;  %v2687_v0 = vmul.f32 %v2671_v12, %v6585_v13  ;;  %v2735_v35 = vmul.f32 %v2719_v48, %v6586_v47  ;;  %v2672_v51 = vmul.f32 %v4360_v18, %v6076_v58 }
 0x2bf   : > { %v2798_v10 = vadd.f32 %v2782_v38, %v2750_v55  ;;  %v2783_v53 = vmul.f32 %v2767_v56, %v6587_v22  ;;  %v2831_v36 = vmul.f32 %v2815_v40, %v6588_v52  ;;  %v2720_v45 = vmul.f32 %v4360_v18, %v6084_v62 }
 0x2c0   : > { %3961 = vmatprep.mubr.f32.mxu0 %v2845_v63  ;;  %v2751_v37 = vadd.f32 %v2735_v35, %v2687_v0  ;;  %v2688_v57 = vmul.f32 %v6589_v6, %v2672_v51  ;;  %v2768_v26 = vmul.f32 %v4360_v18, %v6089_v20  ;;  %v2816_v8 = vmul.f32 %v4360_v18, %v6102_v32  ;;  %v3283_v20 = vld [vmem:[%s6306_s6] ss:$0 sm:$0xff] }
 0x2c1   : > { %v2846_v33 = vadd.f32 %v2830_v4, %v2798_v10  ;;  %v2736_v7 = vmul.f32 %v6590_v24, %v2720_v45 }
 0x2c2   : > { %v2799_v58 = vadd.f32 %v2783_v53, %v2751_v37  ;;  %v2784_v21 = vmul.f32 %v6591_v60, %v2768_v26  ;;  %v2832_v2 = vmul.f32 %v6592_v44, %v2816_v8 }
 0x2c3   : > { %3962 = vmatmul.mubr.f32.gmra.mrb[76].mxu0 %v2846_v33  ;;  %v2752_v23 = vadd.f32 %v2736_v7, %v2688_v57 }
 0x2c4   : > { %v2847_v62 = vadd.f32 %v2831_v36, %v2799_v58 }
 0x2c5   : > { %v2800_v17 = vadd.f32 %v2784_v21, %v2752_v23 }
 0x2c6   : > { %3964 = vmatprep.mubr.f32.mxu0 %v2847_v62 }
 0x2c7   : > { %v2848_v42 = vadd.f32 %v2832_v2, %v2800_v17 }
 0x2c9   : > { %3965 = vmatmul.mubr.f32.gmra.mrb[78].mxu0 %v2848_v42 }
 0x36d   : > { %v3945_v32 = vpop.f32.mrb[64].mxu0 }
 0x36e   : > { %v2944_v18 = vadd.f32 %v3945_v32, %v3283_v20  ;;  %v2938_v5 = vpop.f32.mrb[65].mxu0 }
 0x36f   : > { %v2939_v25 = vadd.f32 %v3283_v20, %v2938_v5 }
 0x370   : > { %3018 = vst [vmem:[%s6231_s12 + $0x8] sm:$0xff] %v2944_v18 }
 0x371   : > { %3017 = vst [vmem:[%s6231_s12] sm:$0xff] %v2939_v25 }
 0x377   : > { %v3948_v16 = vpop.f32.mrb[66].mxu0 }
 0x378   : > { %v2954_v14 = vadd.f32 %v3948_v16, %v3283_v20  ;;  %v2948_v50 = vpop.f32.mrb[67].mxu0 }
 0x379   : > { %v2949_v34 = vadd.f32 %v3283_v20, %v2948_v50 }
 0x37a   : > { %3020 = vst [vmem:[%s6231_s12 + $0x18] sm:$0xff] %v2954_v14 }
 0x37b   : > { %3019 = vst [vmem:[%s6231_s12 + $0x10] sm:$0xff] %v2949_v34 }
 0x37e   : > { %v3951_v3 = vpop.f32.mrb[68].mxu0 }
 0x37f   : > { %v2964_v39 = vadd.f32 %v3951_v3, %v3283_v20  ;;  %v2958_v9 = vpop.f32.mrb[69].mxu0 }
 0x380   : > { %v2959_v15 = vadd.f32 %v3283_v20, %v2958_v9 }
 0x381   : > { %3022 = vst [vmem:[%s6231_s12 + $0x28] sm:$0xff] %v2964_v39 }
 0x382   : > { %3021 = vst [vmem:[%s6231_s12 + $0x20] sm:$0xff] %v2959_v15 }
 0x385   : > { %v3954_v19 = vpop.f32.mrb[70].mxu0 }
 0x386   : > { %v2974_v43 = vadd.f32 %v3954_v19, %v3283_v20  ;;  %v2968_v61 = vpop.f32.mrb[71].mxu0 }
 0x387   : > { %v2969_v1 = vadd.f32 %v3283_v20, %v2968_v61 }
 0x388   : > { %3024 = vst [vmem:[%s6231_s12 + $0x38] sm:$0xff] %v2974_v43 }
 0x389   : > { %3023 = vst [vmem:[%s6231_s12 + $0x30] sm:$0xff] %v2969_v1 }
 0x38c   : > { %v3957_v59 = vpop.f32.mrb[72].mxu0 }
 0x38d   : > { %v2984_v46 = vadd.f32 %v3957_v59, %v3283_v20  ;;  %v2978_v49 = vpop.f32.mrb[73].mxu0 }
 0x38e   : > { %v2979_v31 = vadd.f32 %v3283_v20, %v2978_v49 }
 0x38f   : > { %3026 = vst [vmem:[%s6231_s12 + $0x48] sm:$0xff] %v2984_v46 }
 0x390   : > { %3025 = vst [vmem:[%s6231_s12 + $0x40] sm:$0xff] %v2979_v31  ;;  %v3960_v29 = vpop.f32.mrb[74].mxu0 }
 0x391   : > { %v2994_v28 = vadd.f32 %v3960_v29, %v3283_v20  ;;  %v2988_v11 = vpop.f32.mrb[75].mxu0 }
 0x392   : > { %v2989_v30 = vadd.f32 %v3283_v20, %v2988_v11 }
 0x393   : > { %3028 = vst [vmem:[%s6231_s12 + $0x58] sm:$0xff] %v2994_v28 }
 0x394   : > { %3027 = vst [vmem:[%s6231_s12 + $0x50] sm:$0xff] %v2989_v30 }
 0x396   : > { %v3963_v27 = vpop.f32.mrb[76].mxu0 }
 0x397   : > { %v3004_v41 = vadd.f32 %v3963_v27, %v3283_v20  ;;  %v2998_v38 = vpop.f32.mrb[77].mxu0 }
 0x398   : > { %v2999_v12 = vadd.f32 %v3283_v20, %v2998_v38 }
 0x399   : > { %3030 = vst [vmem:[%s6231_s12 + $0x68] sm:$0xff] %v3004_v41 }
 0x39a   : > { %3029 = vst [vmem:[%s6231_s12 + $0x60] sm:$0xff] %v2999_v12 }
 0x39c   : > { %v3966_v48 = vpop.f32.mrb[78].mxu0 }
 0x39d   : > { %v3014_v55 = vadd.f32 %v3966_v48, %v3283_v20  ;;  %v3008_v54 = vpop.f32.mrb[79].mxu0 }
 0x39e   : > { %v3009_v4 = vadd.f32 %v3283_v20, %v3008_v54 }
 0x39f   : > { %3032 = vst [vmem:[%s6231_s12 + $0x78] sm:$0xff] %v3014_v55 }
 0x3a0   : > { %3031 = vst [vmem:[%s6231_s12 + $0x70] sm:$0xff] %v3009_v4 }
 0x3a1   : > { %4391 = shalt.err (!%p4388_p3)
}
 0x3a2   : > { %s4392_s26 = scalar_lea.hbm %s6252_s23, 2048  ;;  %s4396_s13 = scalar_lea.hbm %s6308_s8, 4096 }
 0x3a3   : > { %p4393_p4 = scmp.ne.s32.totalorder %s6252_s23, %s4392_s26  ;;  %p4397_p9 = scmp.lt.u32.totalorder %s6252_s23, %s6308_s8 }
 0x3a4   : > { %p4398_p5 = scmp.lt.u32.totalorder %s4396_s13, %s4392_s26  ;;  %p4400_p12 = scmp.lt.u32.totalorder %s4392_s26, %s6252_s23 }
 0x3a5   : > { %p4394_p7 = pnand %p4393_p4, %p6593_p11 }
 0x3a6   : > { %p4399_p10 = por %p4398_p5, %p4397_p9 }
 0x3a7   : > { %p4395_p8 = pneg %p4394_p7 }
 0x3a8   : > { %p4401_p13 = por %p4400_p12, %p4399_p10 }
 0x3aa   : > { %p4402_p0 = pnand %p4401_p13, %p4395_p8 }
 0x3ac   : > { %4405 = shalt.err (!%p4402_p0)
}
 0x3ad   : > { %s4448_s24 = smov 128   ;;  %s4449_s9 = smov 8  }
 0x3ae   : > { %4155 = dma.vmem_to_hbm [thread:$0]  (%p6593_p11), %s6254_s15, 2048, %s6252_s23, %s3034_s18, %s4448_s24, %s4448_s24, %s4449_s9  }
 0x3af PF: > { %s3062_s25 = sand.u32 1, %s4432_s27   ;;  %p6594_p1 = scmp.ne.s32.totalorder %s6403_s17, 0 }
 0x3b0   : > { %s3063_s21 = scalar_lea.sflag [#allocation3], %s3062_s25 }
 0x3b1   : > { %p4162_p2 = pnand %p3142_p6, %p6594_p1 }
 0x3b3   : > { %4427 = dma.done.wait (!%p4162_p2), %s3063_s21, 2048  }
 0x3b4   : > { %4429 = vsyncadd (!%p4162_p2), %s3063_s21, 4294965248  ;;  %p19_p3 = scmp.ge.s32.totalorder %s4520_s11, 4   ;;  %s6595_s27 = smov %s4436_s28 }
 0x3b5   : > { %s6596_s28 = smov %s4440_s29  ;;  %s6597_s29 = smov %s4532_s14 }
 0x3b6   : > { %s6598_s30 = smov %s4520_s11  ;;  %21 = sbr.rel (!%p19_p3) target bundleno = 4 (0x4), region = 141 }
 0x3bd   :  { %3068 = vsyncpa [#allocation3], 1 }
 0x3be   :  { %3070 = vsyncpa [#allocation3 + $0x1], 1 }
 0x3bf   :  { %3071 = vsyncpa [#allocation4], 1 }
 0x3c0   :  { %3073 = vsyncpa [#allocation4 + $0x1], 1 }

</bundles_post_ra>
